<compile_context>
chip_gen: v6e
topology: v6e:2x2x1
jax: 0.10.0
libtpu: 0.0.40
codegen_flags: <defaults>
</compile_context>

<pallas_src>
import jax
import jax.numpy as jnp
from jax.experimental import pallas as pl
from jax.experimental.pallas import tpu as pltpu


def _cdiv(a, b):
    return -(-a // b)


def _round_up(x, m):
    return _cdiv(x, m) * m


def _round_down(x, m):
    return (x // m) * m


# --------------------------------------------------------------------------- #
# Kernel
# --------------------------------------------------------------------------- #
def failure_classifier_kernel(
    xv_ref, xp_ref,                      # visual (f32), proprio (f32) batch tiles
    wv_ref, bv_ref, wp_ref, bp_ref,      # synthetic wm encoder params
    w1v_ref, w1p_ref, b1_ref,            # head layer 1 (split along the concat axis)
    w2_ref, b2_ref,                      # head layer 2
    w3_ref, b3_ref,                      # head layer 3 (padded to 128 cols)
    out_ref,
):
    f32 = jnp.float32
    bf16 = jnp.bfloat16

    # Cast f32 inputs to bf16 in-kernel (VPU, hidden under the input DMA).
    xv = xv_ref[...].astype(bf16)
    xp = xp_ref[...].astype(bf16)

    # ---- encode (synthetic wm.encode; reshape+concat handled via split matmul) ----
    lat_vis = jnp.dot(xv, wv_ref[...], preferred_element_type=f32) + bv_ref[...]
    lat_prop = jnp.dot(xp, wp_ref[...], preferred_element_type=f32) + bp_ref[...]

    # ---- head: Linear(latent,512) -> ReLU -> Linear(512,256) -> ReLU -> Linear(256,2 pad 128)
    # rep = concat([lat_vis, lat_prop], -1);  rep @ W1 == lat_vis@W1v + lat_prop@W1p
    h1 = (jnp.dot(lat_vis.astype(bf16), w1v_ref[...], preferred_element_type=f32)
          + jnp.dot(lat_prop.astype(bf16), w1p_ref[...], preferred_element_type=f32)
          + b1_ref[...])
    h1 = jnp.maximum(h1, 0.0)

    h2 = jnp.dot(h1.astype(bf16), w2_ref[...], preferred_element_type=f32) + b2_ref[...]
    h2 = jnp.maximum(h2, 0.0)

    logits = jnp.dot(h2.astype(bf16), w3_ref[...], preferred_element_type=f32) + b3_ref[...]
    out_ref[...] = logits.astype(out_ref.dtype)


# --------------------------------------------------------------------------- #
# Tiling / VMEM sizing helpers
# --------------------------------------------------------------------------- #
def _vmem_limit_bytes():
    """Generation-gated scoped-VMEM limit (~78% of physical, capped at 110 MiB)."""
    cap = 64 << 20  # conservative fallback (v7x physical)
    try:
        cap = int(pltpu.get_tpu_info().vmem_capacity_bytes)
    except Exception:
        pass
    return min(int(cap * 0.78), 110 << 20)


def _select_tile_b(B, Kv, P, n_out_pad, *, weight_vmem_bytes, vmem_budget,
                   out_itemsize, tile_b_cap):
    """Pick a batch tile: VMEM-safe, balanced (bounded padding), grid>=2 when B>=16."""
    # Double-buffered pipelined tile buffers per batch row (xv f32, xp f32, out).
    bytes_per_row = 2 * (Kv * 4 + P * 4 + n_out_pad * out_itemsize)
    avail = vmem_budget - weight_vmem_bytes - (2 << 20)   # 2 MiB slack
    # TODO(synk): if weights alone exceed the budget (very large Kv), a K grid
    #             axis over Kv with an f32 accumulator would be needed.
    tb_vmem = max(avail // bytes_per_row, 8)
    tb = min(tile_b_cap, int(tb_vmem), _round_up(B, 8))
    tb = max(_round_down(tb, 8), 8)
    n_tiles = _cdiv(B, tb)
    # Guarantee >=2 grid steps when there are enough rows so "parallel"
    # dimension semantics can shard across v7x's two TensorCores (harmless
    # ~0.35us extra step on single-TC v5e/v6e).
    if B >= 16 and n_tiles < 2:
        n_tiles = 2
    tb = _round_up(_cdiv(B, n_tiles), 8)   # balanced tiles, <= 7 masked rows/tile
    return tb


def _const_weight_specs(shapes, single_buffer):
    def mk(shape):
        if single_buffer:
            # Weights never change across the batch grid: single-buffer them.
            return pl.BlockSpec(shape, lambda i: (0, 0),
                                pipeline_mode=pl.Buffered(1))
        return pl.BlockSpec(shape, lambda i: (0, 0))
    return [mk(s) for s in shapes]


# --------------------------------------------------------------------------- #
# Wrapper
# --------------------------------------------------------------------------- #
def failure_classifier_forward(visual, proprio, params, *, tile_b_cap=1024):
    """visual: [B, C, H, W] f32 (NCHW); proprio: [B, P] f32. Returns [B, 2] f32."""
    B = visual.shape[0]
    xv = visual.reshape(B, -1)            # metadata-only reshape, stays f32 in HBM
    xp = proprio
    Kv = xv.shape[1]
    P = xp.shape[1]

    weight_args = (params["wv"], params["bv"], params["wp"], params["bp"],
                   params["w1v"], params["w1p"], params["b1"],
                   params["w2"], params["b2"],
                   params["w3"], params["b3"])
    weight_bytes = sum(int(w.size) * w.dtype.itemsize for w in weight_args)
    n_out_pad = params["w3"].shape[1]     # 128 (lane-dense output)
    out_dtype = jnp.bfloat16              # bf16 writeback, upcast in wrapper

    vmem_limit = _vmem_limit_bytes()
    tb = _select_tile_b(
        B, Kv, P, n_out_pad,
        weight_vmem_bytes=2 * weight_bytes,   # conservative: covers the
        vmem_budget=vmem_limit,               # double-buffered fallback path
        out_itemsize=jnp.dtype(out_dtype).itemsize,
        tile_b_cap=tile_b_cap)
    grid = (_cdiv(B, tb),)                # ragged last tile handled by Pallas masking

    # Advisory cost estimate.
    d_vis = params["wv"].shape[1]
    d_prop_pad = params["wp"].shape[1]
    h1 = params["w2"].shape[0]
    h2 = params["w3"].shape[0]
    flops = 2 * B * (Kv * d_vis + P * d_prop_pad + d_vis * h1 + d_prop_pad * h1
                     + h1 * h2 + h2 * n_out_pad)
    bytes_accessed = (B * Kv * 4 + B * P * 4 + weight_bytes
                      + B * n_out_pad * jnp.dtype(out_dtype).itemsize)

    def run(single_buffer_weights):
        in_specs = [
            pl.BlockSpec((tb, Kv), lambda i: (i, 0)),   # visual rows, batch-tiled
            pl.BlockSpec((tb, P), lambda i: (i, 0)),    # proprio rows, batch-tiled
        ] + _const_weight_specs([w.shape for w in weight_args],
                                single_buffer_weights)
        out_specs = pl.BlockSpec((tb, n_out_pad), lambda i: (i, 0))
        return pl.pallas_call(
            failure_classifier_kernel,
            out_shape=jax.ShapeDtypeStruct((B, n_out_pad), out_dtype),
            grid=grid,
            in_specs=in_specs,
            out_specs=out_specs,
            compiler_params=pltpu.CompilerParams(
                dimension_semantics=("parallel",),
                vmem_limit_bytes=vmem_limit),
            cost_estimate=pl.CostEstimate(
                flops=flops, transcendentals=0, bytes_accessed=bytes_accessed),
        )(xv, xp, *weight_args)

    try:
        out = run(single_buffer_weights=True)
    except Exception:
        # TODO(synk): pipeline_mode=pl.Buffered(1) unsupported on this JAX
        # version; fall back to default double-buffered weight BlockSpecs.
        out = run(single_buffer_weights=False)

    return out[:, :2].astype(jnp.float32)


# --------------------------------------------------------------------------- #
# Parameters (synthetic wm encoder + classifier head)
# --------------------------------------------------------------------------- #
def init_params(key, vis_flat_dim, proprio_dim,
                d_vis=64, d_prop=16, d_prop_pad=64,
                h1=512, h2=256, n_out=2, n_out_pad=128):
    ks = jax.random.split(key, 12)
    latent_dim = d_vis + d_prop
    bf16 = jnp.bfloat16

    def w(k, shape, fan_in):
        return (jax.random.normal(k, shape, jnp.float32)
                / jnp.sqrt(fan_in)).astype(bf16)

    def b(k, n):
        return 0.01 * jax.random.normal(k, (1, n), jnp.float32)

    # Synthetic wm encoder (visual).  TODO(synk): stands in for the real wm.encode.
    wv = w(ks[0], (vis_flat_dim, d_vis), vis_flat_dim)
    bv = b(ks[6], d_vis)

    # Synthetic wm encoder (proprio), zero-padded 16 -> 64 latent columns so the
    # prop-path matmuls are MXU-friendly; the pad columns are exactly zero.
    wp = jnp.zeros((proprio_dim, d_prop_pad), jnp.float32).at[:, :d_prop].set(
        jax.random.normal(ks[1], (proprio_dim, d_prop), jnp.float32)
        / jnp.sqrt(proprio_dim))
    bp = jnp.zeros((1, d_prop_pad), jnp.float32).at[:, :d_prop].set(
        0.01 * jax.random.normal(ks[7], (1, d_prop), jnp.float32))

    # Head layer 1, split along the concat axis (rep = [lat_vis, lat_prop]).
    w1v = w(ks[2], (d_vis, h1), latent_dim)
    w1p = jnp.zeros((d_prop_pad, h1), jnp.float32).at[:d_prop, :].set(
        jax.random.normal(ks[3], (d_prop, h1), jnp.float32) / jnp.sqrt(latent_dim))
    b1 = b(ks[8], h1)

    # Head layer 2.
    w2 = w(ks[4], (h1, h2), h1)
    b2 = b(ks[9], h2)

    # Head layer 3: 2 real output columns in a zero-padded 128-wide weight/bias
    # so the kernel's store is lane-dense (unmasked vst).
    w3 = jnp.zeros((h2, n_out_pad), jnp.float32).at[:, :n_out].set(
        jax.random.normal(ks[5], (h2, n_out), jnp.float32) / jnp.sqrt(h2))
    b3 = jnp.zeros((1, n_out_pad), jnp.float32).at[:, :n_out].set(
        0.01 * jax.random.normal(ks[11], (1, n_out), jnp.float32))

    return {
        "wv": wv, "bv": bv,
        "wp": wp.astype(bf16), "bp": bp,
        "w1v": w1v, "w1p": w1p.astype(bf16), "b1": b1,
        "w2": w2, "b2": b2,
        "w3": w3.astype(bf16), "b3": b3,
    }


def reference_forward(visual, proprio, params):
    """Pure-JAX reference with the same bf16-in / f32-accumulate arithmetic."""
    B = visual.shape[0]
    f32, bf16 = jnp.float32, jnp.bfloat16

    def dot(a, wmat):
        return jnp.dot(a.astype(bf16), wmat, preferred_element_type=f32)

    xv = visual.reshape(B, -1)
    xp = proprio
    lat_vis = dot(xv, params["wv"]) + params["bv"]
    lat_prop = dot(xp, params["wp"]) + params["bp"]
    h = dot(lat_vis, params["w1v"]) + dot(lat_prop, params["w1p"]) + params["b1"]
    h = jnp.maximum(h, 0.0)
    h = jnp.maximum(dot(h, params["w2"]) + params["b2"], 0.0)
    out = dot(h, params["w3"]) + params["b3"]
    return out[:, :2]


if __name__ == "__main__":
    B, C, H, W = 2, 4, 16, 16
    P = 8

    key = jax.random.PRNGKey(0)
    k_vis, k_prop, k_param = jax.random.split(key, 3)

    visual = jax.random.normal(k_vis, (B, C, H, W), jnp.float32)   # NCHW
    proprio = jax.random.normal(k_prop, (B, P), jnp.float32)

    params = init_params(k_param, vis_flat_dim=C * H * W, proprio_dim=P)

    out = failure_classifier_forward(visual, proprio, params)
    out = jax.block_until_ready(out)

    ref = reference_forward(visual, proprio, params)
    assert out.shape == (B, 2)
    assert jnp.allclose(out, ref, atol=3e-2, rtol=3e-2), (
        f"max abs err {jnp.max(jnp.abs(out - ref))}")

    print("KERNEL_OK")
</pallas_src>

<mosaic_0001>
module attributes {stable_mosaic.version = 11 : i64} {
  func.func @failure_classifier_kernel(%arg0: i32, %arg1: memref<8x1024xf32, #tpu.memory_space<vmem>>, %arg2: memref<8x8xf32, #tpu.memory_space<vmem>>, %arg3: memref<1024x64xbf16, #tpu.memory_space<vmem>>, %arg4: memref<1x64xf32, #tpu.memory_space<vmem>>, %arg5: memref<8x64xbf16, #tpu.memory_space<vmem>>, %arg6: memref<1x64xf32, #tpu.memory_space<vmem>>, %arg7: memref<64x512xbf16, #tpu.memory_space<vmem>>, %arg8: memref<64x512xbf16, #tpu.memory_space<vmem>>, %arg9: memref<1x512xf32, #tpu.memory_space<vmem>>, %arg10: memref<512x256xbf16, #tpu.memory_space<vmem>>, %arg11: memref<1x256xf32, #tpu.memory_space<vmem>>, %arg12: memref<256x128xbf16, #tpu.memory_space<vmem>>, %arg13: memref<1x128xf32, #tpu.memory_space<vmem>>, %arg14: memref<8x128xbf16, #tpu.memory_space<vmem>>) attributes {dimension_semantics = [#tpu.dimension_semantics<parallel>], iteration_bounds = array<i64: 1>, scalar_prefetch = 0 : i64, scratch_operands = 0 : i64, tpu.core_type = #tpu.core_type<tc>, window_params = [{transform_indices = @transform_0, window_bounds = array<i64: 8, 1024>}, {transform_indices = @transform_1, window_bounds = array<i64: 8, 8>}, {pipeline_mode = #tpu.pipeline_mode<synchronous>, transform_indices = @transform_2, window_bounds = array<i64: 1024, 64>}, {pipeline_mode = #tpu.pipeline_mode<synchronous>, transform_indices = @transform_3, window_bounds = array<i64: 1, 64>}, {pipeline_mode = #tpu.pipeline_mode<synchronous>, transform_indices = @transform_4, window_bounds = array<i64: 8, 64>}, {pipeline_mode = #tpu.pipeline_mode<synchronous>, transform_indices = @transform_5, window_bounds = array<i64: 1, 64>}, {pipeline_mode = #tpu.pipeline_mode<synchronous>, transform_indices = @transform_6, window_bounds = array<i64: 64, 512>}, {pipeline_mode = #tpu.pipeline_mode<synchronous>, transform_indices = @transform_7, window_bounds = array<i64: 64, 512>}, {pipeline_mode = #tpu.pipeline_mode<synchronous>, transform_indices = @transform_8, window_bounds = array<i64: 1, 512>}, {pipeline_mode = #tpu.pipeline_mode<synchronous>, transform_indices = @transform_9, window_bounds = array<i64: 512, 256>}, {pipeline_mode = #tpu.pipeline_mode<synchronous>, transform_indices = @transform_10, window_bounds = array<i64: 1, 256>}, {pipeline_mode = #tpu.pipeline_mode<synchronous>, transform_indices = @transform_11, window_bounds = array<i64: 256, 128>}, {pipeline_mode = #tpu.pipeline_mode<synchronous>, transform_indices = @transform_12, window_bounds = array<i64: 1, 128>}, {transform_indices = @transform_13, window_bounds = array<i64: 8, 128>}]} {
    %c0 = arith.constant 0 : index
    %c0_0 = arith.constant 0 : index
    %0 = vector.load %arg1[%c0, %c0_0] : memref<8x1024xf32, #tpu.memory_space<vmem>>, vector<8x1024xf32>
    %1 = arith.truncf %0 : vector<8x1024xf32> to vector<8x1024xbf16>
    %c0_1 = arith.constant 0 : index
    %c0_2 = arith.constant 0 : index
    %2 = vector.load %arg2[%c0_1, %c0_2] : memref<8x8xf32, #tpu.memory_space<vmem>>, vector<8x8xf32>
    %3 = arith.truncf %2 : vector<8x8xf32> to vector<8x8xbf16>
    %c0_3 = arith.constant 0 : index
    %c0_4 = arith.constant 0 : index
    %4 = vector.load %arg3[%c0_3, %c0_4] : memref<1024x64xbf16, #tpu.memory_space<vmem>>, vector<1024x64xbf16>
    %cst = arith.constant dense<0.000000e+00> : vector<8x64xf32>
    %5 = tpu.matmul %1, %4, %cst {dimension_numbers = #tpu.dot_dimension_numbers<[1], [0], [0], [1], [0, 0, 1, 1], [], []>} : vector<8x1024xbf16>, vector<1024x64xbf16>, vector<8x64xf32> -> vector<8x64xf32>
    %c0_5 = arith.constant 0 : index
    %c0_6 = arith.constant 0 : index
    %6 = vector.load %arg4[%c0_5, %c0_6] : memref<1x64xf32, #tpu.memory_space<vmem>>, vector<1x64xf32>
    %7 = vector.broadcast %6 : vector<1x64xf32> to vector<8x64xf32>
    %8 = arith.addf %5, %7 : vector<8x64xf32>
    %c0_7 = arith.constant 0 : index
    %c0_8 = arith.constant 0 : index
    %9 = vector.load %arg5[%c0_7, %c0_8] : memref<8x64xbf16, #tpu.memory_space<vmem>>, vector<8x64xbf16>
    %cst_9 = arith.constant dense<0.000000e+00> : vector<8x64xf32>
    %10 = tpu.matmul %3, %9, %cst_9 {dimension_numbers = #tpu.dot_dimension_numbers<[1], [0], [0], [1], [0, 0, 1, 1], [], []>} : vector<8x8xbf16>, vector<8x64xbf16>, vector<8x64xf32> -> vector<8x64xf32>
    %c0_10 = arith.constant 0 : index
    %c0_11 = arith.constant 0 : index
    %11 = vector.load %arg6[%c0_10, %c0_11] : memref<1x64xf32, #tpu.memory_space<vmem>>, vector<1x64xf32>
    %12 = vector.broadcast %11 : vector<1x64xf32> to vector<8x64xf32>
    %13 = arith.addf %10, %12 : vector<8x64xf32>
    %14 = arith.truncf %8 : vector<8x64xf32> to vector<8x64xbf16>
    %c0_12 = arith.constant 0 : index
    %c0_13 = arith.constant 0 : index
    %15 = vector.load %arg7[%c0_12, %c0_13] : memref<64x512xbf16, #tpu.memory_space<vmem>>, vector<64x512xbf16>
    %cst_14 = arith.constant dense<0.000000e+00> : vector<8x512xf32>
    %16 = tpu.matmul %14, %15, %cst_14 {dimension_numbers = #tpu.dot_dimension_numbers<[1], [0], [0], [1], [0, 0, 1, 1], [], []>} : vector<8x64xbf16>, vector<64x512xbf16>, vector<8x512xf32> -> vector<8x512xf32>
    %17 = arith.truncf %13 : vector<8x64xf32> to vector<8x64xbf16>
    %c0_15 = arith.constant 0 : index
    %c0_16 = arith.constant 0 : index
    %18 = vector.load %arg8[%c0_15, %c0_16] : memref<64x512xbf16, #tpu.memory_space<vmem>>, vector<64x512xbf16>
    %cst_17 = arith.constant dense<0.000000e+00> : vector<8x512xf32>
    %19 = tpu.matmul %17, %18, %cst_17 {dimension_numbers = #tpu.dot_dimension_numbers<[1], [0], [0], [1], [0, 0, 1, 1], [], []>} : vector<8x64xbf16>, vector<64x512xbf16>, vector<8x512xf32> -> vector<8x512xf32>
    %20 = arith.addf %16, %19 : vector<8x512xf32>
    %c0_18 = arith.constant 0 : index
    %c0_19 = arith.constant 0 : index
    %21 = vector.load %arg9[%c0_18, %c0_19] : memref<1x512xf32, #tpu.memory_space<vmem>>, vector<1x512xf32>
    %22 = vector.broadcast %21 : vector<1x512xf32> to vector<8x512xf32>
    %23 = arith.addf %20, %22 : vector<8x512xf32>
    %cst_20 = arith.constant 0.000000e+00 : f32
    %24 = vector.broadcast %cst_20 : f32 to vector<8x512xf32>
    %25 = arith.maximumf %23, %24 : vector<8x512xf32>
    %26 = arith.truncf %25 : vector<8x512xf32> to vector<8x512xbf16>
    %c0_21 = arith.constant 0 : index
    %c0_22 = arith.constant 0 : index
    %27 = vector.load %arg10[%c0_21, %c0_22] : memref<512x256xbf16, #tpu.memory_space<vmem>>, vector<512x256xbf16>
    %cst_23 = arith.constant dense<0.000000e+00> : vector<8x256xf32>
    %28 = tpu.matmul %26, %27, %cst_23 {dimension_numbers = #tpu.dot_dimension_numbers<[1], [0], [0], [1], [0, 0, 1, 1], [], []>} : vector<8x512xbf16>, vector<512x256xbf16>, vector<8x256xf32> -> vector<8x256xf32>
    %c0_24 = arith.constant 0 : index
    %c0_25 = arith.constant 0 : index
    %29 = vector.load %arg11[%c0_24, %c0_25] : memref<1x256xf32, #tpu.memory_space<vmem>>, vector<1x256xf32>
    %30 = vector.broadcast %29 : vector<1x256xf32> to vector<8x256xf32>
    %31 = arith.addf %28, %30 : vector<8x256xf32>
    %cst_26 = arith.constant 0.000000e+00 : f32
    %32 = vector.broadcast %cst_26 : f32 to vector<8x256xf32>
    %33 = arith.maximumf %31, %32 : vector<8x256xf32>
    %34 = arith.truncf %33 : vector<8x256xf32> to vector<8x256xbf16>
    %c0_27 = arith.constant 0 : index
    %c0_28 = arith.constant 0 : index
    %35 = vector.load %arg12[%c0_27, %c0_28] : memref<256x128xbf16, #tpu.memory_space<vmem>>, vector<256x128xbf16>
    %cst_29 = arith.constant dense<0.000000e+00> : vector<8x128xf32>
    %36 = tpu.matmul %34, %35, %cst_29 {dimension_numbers = #tpu.dot_dimension_numbers<[1], [0], [0], [1], [0, 0, 1, 1], [], []>} : vector<8x256xbf16>, vector<256x128xbf16>, vector<8x128xf32> -> vector<8x128xf32>
    %c0_30 = arith.constant 0 : index
    %c0_31 = arith.constant 0 : index
    %37 = vector.load %arg13[%c0_30, %c0_31] : memref<1x128xf32, #tpu.memory_space<vmem>>, vector<1x128xf32>
    %38 = vector.broadcast %37 : vector<1x128xf32> to vector<8x128xf32>
    %39 = arith.addf %36, %38 : vector<8x128xf32>
    %40 = arith.truncf %39 : vector<8x128xf32> to vector<8x128xbf16>
    %c0_32 = arith.constant 0 : index
    %c0_33 = arith.constant 0 : index
    %41 = vector.load %arg14[%c0_32, %c0_33] : memref<8x128xbf16, #tpu.memory_space<vmem>>, vector<8x128xbf16>
    tpu.vector_store %arg14[%c0_32, %c0_33], %40 {strides = array<i32>} : memref<8x128xbf16, #tpu.memory_space<vmem>>, vector<8x128xbf16>,
    return
  }
  func.func @transform_0(%arg0: i32) -> (i32, i32) {
    %c0_i32 = arith.constant 0 : i32
    %c0_i32_0 = arith.constant 0 : i32
    return %arg0, %c0_i32 : i32, i32
  }
  func.func @transform_1(%arg0: i32) -> (i32, i32) {
    %c0_i32 = arith.constant 0 : i32
    %c0_i32_0 = arith.constant 0 : i32
    return %arg0, %c0_i32 : i32, i32
  }
  func.func @transform_2(%arg0: i32) -> (i32, i32) {
    %c0_i32 = arith.constant 0 : i32
    %c0_i32_0 = arith.constant 0 : i32
    %c0_i32_1 = arith.constant 0 : i32
    return %c0_i32, %c0_i32_0 : i32, i32
  }
  func.func @transform_3(%arg0: i32) -> (i32, i32) {
    %c0_i32 = arith.constant 0 : i32
    %c0_i32_0 = arith.constant 0 : i32
    %c0_i32_1 = arith.constant 0 : i32
    return %c0_i32, %c0_i32_0 : i32, i32
  }
  func.func @transform_4(%arg0: i32) -> (i32, i32) {
    %c0_i32 = arith.constant 0 : i32
    %c0_i32_0 = arith.constant 0 : i32
    %c0_i32_1 = arith.constant 0 : i32
    return %c0_i32, %c0_i32_0 : i32, i32
  }
  func.func @transform_5(%arg0: i32) -> (i32, i32) {
    %c0_i32 = arith.constant 0 : i32
    %c0_i32_0 = arith.constant 0 : i32
    %c0_i32_1 = arith.constant 0 : i32
    return %c0_i32, %c0_i32_0 : i32, i32
  }
  func.func @transform_6(%arg0: i32) -> (i32, i32) {
    %c0_i32 = arith.constant 0 : i32
    %c0_i32_0 = arith.constant 0 : i32
    %c0_i32_1 = arith.constant 0 : i32
    return %c0_i32, %c0_i32_0 : i32, i32
  }
  func.func @transform_7(%arg0: i32) -> (i32, i32) {
    %c0_i32 = arith.constant 0 : i32
    %c0_i32_0 = arith.constant 0 : i32
    %c0_i32_1 = arith.constant 0 : i32
    return %c0_i32, %c0_i32_0 : i32, i32
  }
  func.func @transform_8(%arg0: i32) -> (i32, i32) {
    %c0_i32 = arith.constant 0 : i32
    %c0_i32_0 = arith.constant 0 : i32
    %c0_i32_1 = arith.constant 0 : i32
    return %c0_i32, %c0_i32_0 : i32, i32
  }
  func.func @transform_9(%arg0: i32) -> (i32, i32) {
    %c0_i32 = arith.constant 0 : i32
    %c0_i32_0 = arith.constant 0 : i32
    %c0_i32_1 = arith.constant 0 : i32
    return %c0_i32, %c0_i32_0 : i32, i32
  }
  func.func @transform_10(%arg0: i32) -> (i32, i32) {
    %c0_i32 = arith.constant 0 : i32
    %c0_i32_0 = arith.constant 0 : i32
    %c0_i32_1 = arith.constant 0 : i32
    return %c0_i32, %c0_i32_0 : i32, i32
  }
  func.func @transform_11(%arg0: i32) -> (i32, i32) {
    %c0_i32 = arith.constant 0 : i32
    %c0_i32_0 = arith.constant 0 : i32
    %c0_i32_1 = arith.constant 0 : i32
    return %c0_i32, %c0_i32_0 : i32, i32
  }
  func.func @transform_12(%arg0: i32) -> (i32, i32) {
    %c0_i32 = arith.constant 0 : i32
    %c0_i32_0 = arith.constant 0 : i32
    %c0_i32_1 = arith.constant 0 : i32
    return %c0_i32, %c0_i32_0 : i32, i32
  }
  func.func @transform_13(%arg0: i32) -> (i32, i32) {
    %c0_i32 = arith.constant 0 : i32
    %c0_i32_0 = arith.constant 0 : i32
    return %arg0, %c0_i32 : i32, i32
  }
}

module attributes {stable_mosaic.version = 11 : i64} {
  func.func @failure_classifier_kernel(%arg0: i32, %arg1: memref<8x1024xf32, #tpu.memory_space<vmem>>, %arg2: memref<8x8xf32, #tpu.memory_space<vmem>>, %arg3: memref<1024x64xbf16, #tpu.memory_space<vmem>>, %arg4: memref<1x64xf32, #tpu.memory_space<vmem>>, %arg5: memref<8x64xbf16, #tpu.memory_space<vmem>>, %arg6: memref<1x64xf32, #tpu.memory_space<vmem>>, %arg7: memref<64x512xbf16, #tpu.memory_space<vmem>>, %arg8: memref<64x512xbf16, #tpu.memory_space<vmem>>, %arg9: memref<1x512xf32, #tpu.memory_space<vmem>>, %arg10: memref<512x256xbf16, #tpu.memory_space<vmem>>, %arg11: memref<1x256xf32, #tpu.memory_space<vmem>>, %arg12: memref<256x128xbf16, #tpu.memory_space<vmem>>, %arg13: memref<1x128xf32, #tpu.memory_space<vmem>>, %arg14: memref<8x128xbf16, #tpu.memory_space<vmem>>) attributes {dimension_semantics = [#tpu.dimension_semantics<parallel>], iteration_bounds = array<i64: 1>, scalar_prefetch = 0 : i64, scratch_operands = 0 : i64, tpu.core_type = #tpu.core_type<tc>, window_params = [{transform_indices = @transform_0, window_bounds = array<i64: 8, 1024>}, {transform_indices = @transform_1, window_bounds = array<i64: 8, 8>}, {pipeline_mode = #tpu.pipeline_mode<synchronous>, transform_indices = @transform_2, window_bounds = array<i64: 1024, 64>}, {pipeline_mode = #tpu.pipeline_mode<synchronous>, transform_indices = @transform_3, window_bounds = array<i64: 1, 64>}, {pipeline_mode = #tpu.pipeline_mode<synchronous>, transform_indices = @transform_4, window_bounds = array<i64: 8, 64>}, {pipeline_mode = #tpu.pipeline_mode<synchronous>, transform_indices = @transform_5, window_bounds = array<i64: 1, 64>}, {pipeline_mode = #tpu.pipeline_mode<synchronous>, transform_indices = @transform_6, window_bounds = array<i64: 64, 512>}, {pipeline_mode = #tpu.pipeline_mode<synchronous>, transform_indices = @transform_7, window_bounds = array<i64: 64, 512>}, {pipeline_mode = #tpu.pipeline_mode<synchronous>, transform_indices = @transform_8, window_bounds = array<i64: 1, 512>}, {pipeline_mode = #tpu.pipeline_mode<synchronous>, transform_indices = @transform_9, window_bounds = array<i64: 512, 256>}, {pipeline_mode = #tpu.pipeline_mode<synchronous>, transform_indices = @transform_10, window_bounds = array<i64: 1, 256>}, {pipeline_mode = #tpu.pipeline_mode<synchronous>, transform_indices = @transform_11, window_bounds = array<i64: 256, 128>}, {pipeline_mode = #tpu.pipeline_mode<synchronous>, transform_indices = @transform_12, window_bounds = array<i64: 1, 128>}, {transform_indices = @transform_13, window_bounds = array<i64: 8, 128>}]} {
    %c0 = arith.constant 0 : index
    %c0_0 = arith.constant 0 : index
    %0 = vector.load %arg1[%c0, %c0_0] : memref<8x1024xf32, #tpu.memory_space<vmem>>, vector<8x1024xf32>
    %1 = arith.truncf %0 : vector<8x1024xf32> to vector<8x1024xbf16>
    %c0_1 = arith.constant 0 : index
    %c0_2 = arith.constant 0 : index
    %2 = vector.load %arg2[%c0_1, %c0_2] : memref<8x8xf32, #tpu.memory_space<vmem>>, vector<8x8xf32>
    %3 = arith.truncf %2 : vector<8x8xf32> to vector<8x8xbf16>
    %c0_3 = arith.constant 0 : index
    %c0_4 = arith.constant 0 : index
    %4 = vector.load %arg3[%c0_3, %c0_4] : memref<1024x64xbf16, #tpu.memory_space<vmem>>, vector<1024x64xbf16>
    %cst = arith.constant dense<0.000000e+00> : vector<8x64xf32>
    %5 = tpu.matmul %1, %4, %cst {dimension_numbers = #tpu.dot_dimension_numbers<[1], [0], [0], [1], [0, 0, 1, 1], [], []>} : vector<8x1024xbf16>, vector<1024x64xbf16>, vector<8x64xf32> -> vector<8x64xf32>
    %c0_5 = arith.constant 0 : index
    %c0_6 = arith.constant 0 : index
    %6 = vector.load %arg4[%c0_5, %c0_6] : memref<1x64xf32, #tpu.memory_space<vmem>>, vector<1x64xf32>
    %7 = vector.broadcast %6 : vector<1x64xf32> to vector<8x64xf32>
    %8 = arith.addf %5, %7 : vector<8x64xf32>
    %c0_7 = arith.constant 0 : index
    %c0_8 = arith.constant 0 : index
    %9 = vector.load %arg5[%c0_7, %c0_8] : memref<8x64xbf16, #tpu.memory_space<vmem>>, vector<8x64xbf16>
    %cst_9 = arith.constant dense<0.000000e+00> : vector<8x64xf32>
    %10 = tpu.matmul %3, %9, %cst_9 {dimension_numbers = #tpu.dot_dimension_numbers<[1], [0], [0], [1], [0, 0, 1, 1], [], []>} : vector<8x8xbf16>, vector<8x64xbf16>, vector<8x64xf32> -> vector<8x64xf32>
    %c0_10 = arith.constant 0 : index
    %c0_11 = arith.constant 0 : index
    %11 = vector.load %arg6[%c0_10, %c0_11] : memref<1x64xf32, #tpu.memory_space<vmem>>, vector<1x64xf32>
    %12 = vector.broadcast %11 : vector<1x64xf32> to vector<8x64xf32>
    %13 = arith.addf %10, %12 : vector<8x64xf32>
    %14 = arith.truncf %8 : vector<8x64xf32> to vector<8x64xbf16>
    %c0_12 = arith.constant 0 : index
    %c0_13 = arith.constant 0 : index
    %15 = vector.load %arg7[%c0_12, %c0_13] : memref<64x512xbf16, #tpu.memory_space<vmem>>, vector<64x512xbf16>
    %cst_14 = arith.constant dense<0.000000e+00> : vector<8x512xf32>
    %16 = tpu.matmul %14, %15, %cst_14 {dimension_numbers = #tpu.dot_dimension_numbers<[1], [0], [0], [1], [0, 0, 1, 1], [], []>} : vector<8x64xbf16>, vector<64x512xbf16>, vector<8x512xf32> -> vector<8x512xf32>
    %17 = arith.truncf %13 : vector<8x64xf32> to vector<8x64xbf16>
    %c0_15 = arith.constant 0 : index
    %c0_16 = arith.constant 0 : index
    %18 = vector.load %arg8[%c0_15, %c0_16] : memref<64x512xbf16, #tpu.memory_space<vmem>>, vector<64x512xbf16>
    %cst_17 = arith.constant dense<0.000000e+00> : vector<8x512xf32>
    %19 = tpu.matmul %17, %18, %cst_17 {dimension_numbers = #tpu.dot_dimension_numbers<[1], [0], [0], [1], [0, 0, 1, 1], [], []>} : vector<8x64xbf16>, vector<64x512xbf16>, vector<8x512xf32> -> vector<8x512xf32>
    %20 = arith.addf %16, %19 : vector<8x512xf32>
    %c0_18 = arith.constant 0 : index
    %c0_19 = arith.constant 0 : index
    %21 = vector.load %arg9[%c0_18, %c0_19] : memref<1x512xf32, #tpu.memory_space<vmem>>, vector<1x512xf32>
    %22 = vector.broadcast %21 : vector<1x512xf32> to vector<8x512xf32>
    %23 = arith.addf %20, %22 : vector<8x512xf32>
    %cst_20 = arith.constant 0.000000e+00 : f32
    %24 = vector.broadcast %cst_20 : f32 to vector<8x512xf32>
    %25 = arith.maximumf %23, %24 : vector<8x512xf32>
    %26 = arith.truncf %25 : vector<8x512xf32> to vector<8x512xbf16>
    %c0_21 = arith.constant 0 : index
    %c0_22 = arith.constant 0 : index
    %27 = vector.load %arg10[%c0_21, %c0_22] : memref<512x256xbf16, #tpu.memory_space<vmem>>, vector<512x256xbf16>
    %cst_23 = arith.constant dense<0.000000e+00> : vector<8x256xf32>
    %28 = tpu.matmul %26, %27, %cst_23 {dimension_numbers = #tpu.dot_dimension_numbers<[1], [0], [0], [1], [0, 0, 1, 1], [], []>} : vector<8x512xbf16>, vector<512x256xbf16>, vector<8x256xf32> -> vector<8x256xf32>
    %c0_24 = arith.constant 0 : index
    %c0_25 = arith.constant 0 : index
    %29 = vector.load %arg11[%c0_24, %c0_25] : memref<1x256xf32, #tpu.memory_space<vmem>>, vector<1x256xf32>
    %30 = vector.broadcast %29 : vector<1x256xf32> to vector<8x256xf32>
    %31 = arith.addf %28, %30 : vector<8x256xf32>
    %cst_26 = arith.constant 0.000000e+00 : f32
    %32 = vector.broadcast %cst_26 : f32 to vector<8x256xf32>
    %33 = arith.maximumf %31, %32 : vector<8x256xf32>
    %34 = arith.truncf %33 : vector<8x256xf32> to vector<8x256xbf16>
    %c0_27 = arith.constant 0 : index
    %c0_28 = arith.constant 0 : index
    %35 = vector.load %arg12[%c0_27, %c0_28] : memref<256x128xbf16, #tpu.memory_space<vmem>>, vector<256x128xbf16>
    %cst_29 = arith.constant dense<0.000000e+00> : vector<8x128xf32>
    %36 = tpu.matmul %34, %35, %cst_29 {dimension_numbers = #tpu.dot_dimension_numbers<[1], [0], [0], [1], [0, 0, 1, 1], [], []>} : vector<8x256xbf16>, vector<256x128xbf16>, vector<8x128xf32> -> vector<8x128xf32>
    %c0_30 = arith.constant 0 : index
    %c0_31 = arith.constant 0 : index
    %37 = vector.load %arg13[%c0_30, %c0_31] : memref<1x128xf32, #tpu.memory_space<vmem>>, vector<1x128xf32>
    %38 = vector.broadcast %37 : vector<1x128xf32> to vector<8x128xf32>
    %39 = arith.addf %36, %38 : vector<8x128xf32>
    %40 = arith.truncf %39 : vector<8x128xf32> to vector<8x128xbf16>
    %c0_32 = arith.constant 0 : index
    %c0_33 = arith.constant 0 : index
    %41 = vector.load %arg14[%c0_32, %c0_33] : memref<8x128xbf16, #tpu.memory_space<vmem>>, vector<8x128xbf16>
    tpu.vector_store %arg14[%c0_32, %c0_33], %40 {strides = array<i32>} : memref<8x128xbf16, #tpu.memory_space<vmem>>, vector<8x128xbf16>,
    return
  }
  func.func @transform_0(%arg0: i32) -> (i32, i32) {
    %c0_i32 = arith.constant 0 : i32
    %c0_i32_0 = arith.constant 0 : i32
    return %arg0, %c0_i32 : i32, i32
  }
  func.func @transform_1(%arg0: i32) -> (i32, i32) {
    %c0_i32 = arith.constant 0 : i32
    %c0_i32_0 = arith.constant 0 : i32
    return %arg0, %c0_i32 : i32, i32
  }
  func.func @transform_2(%arg0: i32) -> (i32, i32) {
    %c0_i32 = arith.constant 0 : i32
    %c0_i32_0 = arith.constant 0 : i32
    %c0_i32_1 = arith.constant 0 : i32
    return %c0_i32, %c0_i32_0 : i32, i32
  }
  func.func @transform_3(%arg0: i32) -> (i32, i32) {
    %c0_i32 = arith.constant 0 : i32
    %c0_i32_0 = arith.constant 0 : i32
    %c0_i32_1 = arith.constant 0 : i32
    return %c0_i32, %c0_i32_0 : i32, i32
  }
  func.func @transform_4(%arg0: i32) -> (i32, i32) {
    %c0_i32 = arith.constant 0 : i32
    %c0_i32_0 = arith.constant 0 : i32
    %c0_i32_1 = arith.constant 0 : i32
    return %c0_i32, %c0_i32_0 : i32, i32
  }
  func.func @transform_5(%arg0: i32) -> (i32, i32) {
    %c0_i32 = arith.constant 0 : i32
    %c0_i32_0 = arith.constant 0 : i32
    %c0_i32_1 = arith.constant 0 : i32
    return %c0_i32, %c0_i32_0 : i32, i32
  }
  func.func @transform_6(%arg0: i32) -> (i32, i32) {
    %c0_i32 = arith.constant 0 : i32
    %c0_i32_0 = arith.constant 0 : i32
    %c0_i32_1 = arith.constant 0 : i32
    return %c0_i32, %c0_i32_0 : i32, i32
  }
  func.func @transform_7(%arg0: i32) -> (i32, i32) {
    %c0_i32 = arith.constant 0 : i32
    %c0_i32_0 = arith.constant 0 : i32
    %c0_i32_1 = arith.constant 0 : i32
    return %c0_i32, %c0_i32_0 : i32, i32
  }
  func.func @transform_8(%arg0: i32) -> (i32, i32) {
    %c0_i32 = arith.constant 0 : i32
    %c0_i32_0 = arith.constant 0 : i32
    %c0_i32_1 = arith.constant 0 : i32
    return %c0_i32, %c0_i32_0 : i32, i32
  }
  func.func @transform_9(%arg0: i32) -> (i32, i32) {
    %c0_i32 = arith.constant 0 : i32
    %c0_i32_0 = arith.constant 0 : i32
    %c0_i32_1 = arith.constant 0 : i32
    return %c0_i32, %c0_i32_0 : i32, i32
  }
  func.func @transform_10(%arg0: i32) -> (i32, i32) {
    %c0_i32 = arith.constant 0 : i32
    %c0_i32_0 = arith.constant 0 : i32
    %c0_i32_1 = arith.constant 0 : i32
    return %c0_i32, %c0_i32_0 : i32, i32
  }
  func.func @transform_11(%arg0: i32) -> (i32, i32) {
    %c0_i32 = arith.constant 0 : i32
    %c0_i32_0 = arith.constant 0 : i32
    %c0_i32_1 = arith.constant 0 : i32
    return %c0_i32, %c0_i32_0 : i32, i32
  }
  func.func @transform_12(%arg0: i32) -> (i32, i32) {
    %c0_i32 = arith.constant 0 : i32
    %c0_i32_0 = arith.constant 0 : i32
    %c0_i32_1 = arith.constant 0 : i32
    return %c0_i32, %c0_i32_0 : i32, i32
  }
  func.func @transform_13(%arg0: i32) -> (i32, i32) {
    %c0_i32 = arith.constant 0 : i32
    %c0_i32_0 = arith.constant 0 : i32
    return %arg0, %c0_i32 : i32, i32
  }
}

</mosaic_0001>

<bundles_post_ra>
// kernel: tpu_custom_call.1
= control target key start
LH: loop header
LB: loop body
LE: loop exit
PB: predicated region body
PF: predicated region fallthrough
CT: control target
= control target key end

     0   :  { %18 = vsyncpa [#allocation3], 0  ;;  %s3469_s0 = inlined_call_operand.vmem [shape: f32[2,1024], index: 0, kind: input, shape index: {}]   ;;  %s3470_s1 = inlined_call_operand.hbm [shape: f32[2,8], index: 1, kind: input, shape index: {}]   ;;  %s3471_s2 = inlined_call_operand.vmem [shape: bf16[1024,64], index: 2, kind: input, shape index: {}]   ;;  %s3472_s3 = inlined_call_operand.hbm [shape: f32[1,64], index: 3, kind: input, shape index: {}]   ;;  %s3473_s4 = inlined_call_operand.hbm [shape: bf16[8,64], index: 4, kind: input, shape index: {}]   ;;  %s3474_s5 = inlined_call_operand.hbm [shape: f32[1,64], index: 5, kind: input, shape index: {}]   ;;  %s3475_s6 = inlined_call_operand.vmem [shape: bf16[64,512], index: 6, kind: input, shape index: {}]   ;;  %s3476_s7 = inlined_call_operand.vmem [shape: bf16[64,512], index: 7, kind: input, shape index: {}]   ;;  %s3477_s8 = inlined_call_operand.hbm [shape: f32[1,512], index: 8, kind: input, shape index: {}]   ;;  %s3478_s9 = inlined_call_operand.vmem [shape: bf16[512,256], index: 9, kind: input, shape index: {}]   ;;  %s3479_s10 = inlined_call_operand.vmem [shape: f32[1,256], index: 10, kind: input, shape index: {}]   ;;  %s3480_s11 = inlined_call_operand.hbm [shape: bf16[256,128], index: 11, kind: input, shape index: {}]   ;;  %s3481_s12 = inlined_call_operand.hbm [shape: f32[1,128], index: 12, kind: input, shape index: {}]   ;;  %s3482_s13 = inlined_call_operand.hbm [shape: bf16[2,128], index: 13, kind: output, shape index: {}]  }
   0x1   :  { %19 = vsyncpa [#allocation6], 0 }
   0x2   :  { %20 = vsyncpa [#allocation9], 0 }
   0x3   :  { %21 = vsyncpa [#allocation12], 0 }
   0x4   :  { %22 = vsyncpa [#allocation4], 0 }
   0x5   :  { %29 = vsyncadd [#allocation3], 96  ;;  %s2811_s25 = smov [#allocation5]   ;;  %s2812_s27 = smov [#allocation8]  }
   0x6   :  { %s45_s26 = sshll.u32 %s2811_s25, 4  ;;  %s65_s28 = sshll.u32 %s2812_s27, 4  ;;  %s46_s26 = int_to_ptr.vmem [resolvable:$true] %s45_s26  ;;  %s66_s28 = int_to_ptr.vmem [resolvable:$true] %s65_s28 }
   0x7   :  { %s2649_s29 = scalar_lea.vmem %s46_s26, 16  ;;  %s2653_s30 = scalar_lea.vmem %s46_s26, 32 }
   0x8   :  { %p2650_p0 = scmp.ne.s32.totalorder %s46_s26, %s2649_s29  ;;  %p2654_p1 = scmp.lt.s32.totalorder %s46_s26, %s46_s26 }
   0x9   :  { %p2655_p2 = scmp.lt.s32.totalorder %s2653_s30, %s2649_s29 }
   0xb   :  { %p2656_p3 = por %p2655_p2, %p2654_p1 }
   0xd   :  { %p2657_p4 = pnand %p2656_p3, %p2650_p0 }
   0xf   :  { %2660 = shalt.err (!%p2657_p4)
}
  0x10   :  { %48 = dma.hbm_to_vmem [thread:$0]  %s3472_s3, 16, %s46_s26, [#allocation6]  }
  0x11   :  { %s2669_s16 = scalar_lea.vmem %s66_s28, 16  ;;  %s2673_s17 = scalar_lea.vmem %s66_s28, 32 }
  0x12   :  { %p2670_p5 = scmp.ne.s32.totalorder %s66_s28, %s2669_s16  ;;  %p2674_p6 = scmp.lt.s32.totalorder %s66_s28, %s66_s28 }
  0x13   :  { %p2675_p7 = scmp.lt.s32.totalorder %s2673_s17, %s2669_s16 }
  0x15   :  { %p2676_p8 = por %p2675_p7, %p2674_p6 }
  0x17   :  { %p2677_p9 = pnand %p2676_p8, %p2670_p5 }
  0x19   :  { %2680 = shalt.err (!%p2677_p9)
}
  0x1a   :  { %68 = dma.hbm_to_vmem [thread:$0]  %s3474_s5, 16, %s66_s28, [#allocation9]  }
  0x1b   :  { %s2813_s20 = smov [#allocation11]  }
  0x1c   :  { %s92_s21 = sshll.u32 %s2813_s20, 4  ;;  %s93_s21 = int_to_ptr.vmem [resolvable:$true] %s92_s21 }
  0x1d   :  { %s2689_s22 = scalar_lea.vmem %s93_s21, 2048  ;;  %p2694_p11 = scmp.lt.s32.totalorder %s93_s21, %s93_s21 }
  0x1e   :  { %p2690_p10 = scmp.ne.s32.totalorder %s93_s21, %s2689_s22  ;;  %p2695_p12 = scmp.lt.s32.totalorder %s2689_s22, %s2689_s22 }
  0x20   :  { %p2696_p13 = por %p2695_p12, %p2694_p11 }
  0x22   :  { %p2697_p0 = pnand %p2696_p13, %p2690_p10 }
  0x24   :  { %2700 = shalt.err (!%p2697_p0)
}
  0x25   :  { %s2814_s3 = smov 64   ;;  %s2815_s23 = smov 4  }
  0x26   :  { %98 = dma.hbm_to_vmem [thread:$0]  %s3480_s11, 2048, %s93_s21, [#allocation12], %s2814_s3, %s2814_s3, %s2815_s23  }
  0x27   :  { %s2816_s26 = smov [#allocation2]  }
  0x28   :  { %s30_s27 = sshll.u32 %s2816_s26, 4  ;;  %s31_s27 = int_to_ptr.vmem [resolvable:$true] %s30_s27 }
  0x29   :  { %s2709_s5 = scalar_lea.vmem %s31_s27, 32  ;;  %s2713_s28 = scalar_lea.vmem %s31_s27, 128 }
  0x2a   :  { %p2710_p1 = scmp.ne.s32.totalorder %s31_s27, %s2709_s5  ;;  %p2714_p2 = scmp.lt.s32.totalorder %s31_s27, %s31_s27 }
  0x2b   :  { %p2715_p3 = scmp.lt.s32.totalorder %s2713_s28, %s2709_s5 }
  0x2d   :  { %p2716_p4 = por %p2715_p3, %p2714_p2 }
  0x2f   :  { %p2717_p5 = pnand %p2716_p4, %p2710_p1 }
  0x31   :  { %2720 = shalt.err (!%p2717_p5)
}
  0x32   :  { %s2817_s29 = smov 32   ;;  %s2818_s30 = smov 2  }
  0x33   :  { %36 = dma.hbm_to_vmem [thread:$0]  %s3470_s1, 32, %s31_s27, [#allocation3], %s2817_s29, %s2817_s29, %s2818_s30  }
  0x34   :  { %s2819_s16 = smov [#allocation7]   ;;  %s2820_s11 = smov [#allocation10]  }
  0x35   :  { %s55_s17 = sshll.u32 %s2819_s16, 4  ;;  %s79_s18 = sshll.u32 %s2820_s11, 4  ;;  %s56_s17 = int_to_ptr.vmem [resolvable:$true] %s55_s17  ;;  %s80_s18 = int_to_ptr.vmem [resolvable:$true] %s79_s18 }
  0x36   :  { %s2729_s19 = scalar_lea.vmem %s56_s17, 64  ;;  %p2734_p7 = scmp.lt.s32.totalorder %s56_s17, %s56_s17 }
  0x37   :  { %p2730_p6 = scmp.ne.s32.totalorder %s56_s17, %s2729_s19  ;;  %p2735_p8 = scmp.lt.s32.totalorder %s2729_s19, %s2729_s19 }
  0x39   :  { %p2736_p9 = por %p2735_p8, %p2734_p7 }
  0x3b   :  { %p2737_p10 = pnand %p2736_p9, %p2730_p6 }
  0x3d   :  { %2740 = shalt.err (!%p2737_p10)
}
  0x3e   :  { %58 = dma.hbm_to_vmem [thread:$0]  %s3473_s4, 64, %s56_s17, [#allocation6]  }
  0x3f   :  { %s2749_s22 = scalar_lea.vmem %s80_s18, 64  ;;  %p2754_p12 = scmp.lt.s32.totalorder %s80_s18, %s80_s18 }
  0x40   :  { %p2750_p11 = scmp.ne.s32.totalorder %s80_s18, %s2749_s22  ;;  %p2755_p13 = scmp.lt.s32.totalorder %s2749_s22, %s2749_s22 }
  0x42   :  { %p2756_p0 = por %p2755_p13, %p2754_p12 }
  0x44   :  { %p2757_p1 = pnand %p2756_p0, %p2750_p11 }
  0x46   :  { %2760 = shalt.err (!%p2757_p1)
}
  0x47   :  { %82 = dma.hbm_to_vmem [thread:$0]  %s3477_s8, 64, %s80_s18, [#allocation9]  }
  0x48   :  { %s2821_s23 = smov [#allocation13]  }
  0x49   :  { %s105_s24 = sshll.u32 %s2821_s23, 4  ;;  %s106_s24 = int_to_ptr.vmem [resolvable:$true] %s105_s24 }
  0x4a   :  { %s2769_s25 = scalar_lea.vmem %s106_s24, 16  ;;  %s2773_s26 = scalar_lea.vmem %s106_s24, 32 }
  0x4b   :  { %p2770_p2 = scmp.ne.s32.totalorder %s106_s24, %s2769_s25  ;;  %p2774_p3 = scmp.lt.s32.totalorder %s106_s24, %s106_s24 }
  0x4c   :  { %p2775_p4 = scmp.lt.s32.totalorder %s2773_s26, %s2769_s25 }
  0x4e   :  { %p2776_p5 = por %p2775_p4, %p2774_p3 }
  0x50   :  { %p2777_p6 = pnand %p2776_p5, %p2770_p2 }
  0x52   :  { %2780 = shalt.err (!%p2777_p6)
}
  0x53   :  { %108 = dma.hbm_to_vmem [thread:$0]  %s3481_s12, 16, %s106_s24, [#allocation12]  }
  0x54   :  { %2801 = dma.done.wait [#allocation3], 128  }
  0x55   :  { %2802 = vsyncadd [#allocation3], 4294967168 }
  0x56   :  { %2803 = dma.done.wait [#allocation6], 80  }
  0x57   :  { %2804 = vsyncadd [#allocation6], 4294967216 }
  0x58   :  { %2805 = dma.done.wait [#allocation9], 80  }
  0x59   :  { %2806 = vsyncadd [#allocation9], 4294967216 }
  0x5a   :  { %2807 = dma.done.wait [#allocation12], 2064  }
  0x5b   :  { %2808 = vsyncadd [#allocation12], 4294965232  ;;  %v2405_v0 = vld [vmem:[%s3471_s2 + $0x78] sm:$0xff]   ;;  %v2409_v4 = vld [vmem:[%s3471_s2 + $0x70] sm:$0xff]   ;;  %v2822_v23 = vmov 1983009808   ;;  %v154_v25 = vlaneseq }
  0x5c   :  { %v2406_v1 = vld [vmem:[%s3471_s2 + $0x38] sm:$0xff]   ;;  %2268 = vmatprep.subr.bf16.mxu0 %v2405_v0  ;;  %v2410_v5 = vld [vmem:[%s3471_s2 + $0x30] sm:$0xff]   ;;  %v2413_v8 = vld [vmem:[%s3471_s2 + $0x68] sm:$0xff]   ;;  %v152_v24 = vunpack.c.l.s4 %v2822_v23  ;;  %vm928_vm0 = vcmask 1043456   ;;  %vm2824_vm1 = vmmov 0   ;;  %vm924_vm2 = vcmask 64512  }
  0x5d   :  { %v2407_v2 = vld [vmem:[%s3471_s2 + $0xf8] sm:$0xff]   ;;  %2269 = vmatpush3.bf16.msra.mxu0 %v2406_v1  ;;  %v2411_v6 = vld [vmem:[%s3471_s2 + $0xf0] sm:$0xff]   ;;  %v2414_v9 = vld [vmem:[%s3471_s2 + $0x28] sm:$0xff]   ;;  %v3002_v31 = vshrl.u32 %v154_v25, 7  ;;  %vm1086_vm3 = vcmask 523264  }
  0x5e   :  { %v2408_v3 = vld [vmem:[%s3471_s2 + $0xb8] sm:$0xff]   ;;  %2290 = vmatprep.subr.bf16.mxu1 %v2407_v2  ;;  %2270 = vmatprep.subr.bf16.mxu0 %v2409_v4  ;;  %v2412_v7 = vld [vmem:[%s3471_s2 + $0xb0] sm:$0xff]   ;;  %v2415_v10 = vld [vmem:[%s3471_s2 + $0xe8] sm:$0xff]   ;;  %v153_v30 = vunpack.c.0.s8 %v152_v24 }
  0x5f   :  { %2291 = vmatpush3.bf16.msra.mxu1 %v2408_v3  ;;  %v2416_v11 = vld [vmem:[%s3471_s2 + $0xa8] sm:$0xff]   ;;  %v2417_v12 = vld [vmem:[%s3471_s2 + $0x60] sm:$0xff]   ;;  %v2421_v16 = vld [vmem:[%s3471_s2 + $0x58] sm:$0xff]  }
  0x60   :  { %2292 = vmatprep.subr.bf16.mxu1 %v2411_v6  ;;  %v2418_v13 = vld [vmem:[%s3471_s2 + $0x20] sm:$0xff]   ;;  %v2422_v17 = vld [vmem:[%s3471_s2 + $0x18] sm:$0xff]   ;;  %v2425_v20 = vld [vmem:[%s3471_s2 + $0x50] sm:$0xff]   ;;  %v3017_v36 = vsub.s32 %v153_v30, %v3002_v31 }
  0x61   :  { %2271 = vmatpush3.bf16.msra.mxu0 %v2410_v5  ;;  %v2419_v14 = vld [vmem:[%s3471_s2 + $0xe0] sm:$0xff]   ;;  %v2423_v18 = vld [vmem:[%s3471_s2 + $0xd8] sm:$0xff]   ;;  %v2426_v21 = vld [vmem:[%s3471_s2 + $0x10] sm:$0xff]  }
  0x62   :  { %2272 = vmatprep.subr.bf16.mxu0 %v2413_v8  ;;  %v2420_v15 = vld [vmem:[%s3471_s2 + $0xa0] sm:$0xff]   ;;  %v2424_v19 = vld [vmem:[%s3471_s2 + $0x98] sm:$0xff]   ;;  %v2427_v22 = vld [vmem:[%s3471_s2 + $0xd0] sm:$0xff]  }
  0x63   :  { %2293 = vmatpush3.bf16.msra.mxu1 %v2412_v7  ;;  %v2428_v26 = vld [vmem:[%s3471_s2 + $0x90] sm:$0xff]   ;;  %v2429_v27 = vld [vmem:[%s3471_s2 + $0x48] sm:$0xff]   ;;  %v2433_v33 = vld [vmem:[%s3471_s2 + $0x40] sm:$0xff]  }
  0x64   :  { %2294 = vmatprep.subr.bf16.mxu1 %v2415_v10  ;;  %v2430_v28 = vld [vmem:[%s3471_s2 + $0x8] sm:$0xff]   ;;  %v2434_v34 = vld [vmem:[%s3471_s2] sm:$0xff]   ;;  %v2441_v42 = vld [vmem:[%s3471_s2 + $0x178] sm:$0xff]  }
  0x65   :  { %2273 = vmatpush3.bf16.msra.mxu0 %v2414_v9  ;;  %v2431_v29 = vld [vmem:[%s3471_s2 + $0xc8] sm:$0xff]   ;;  %v2435_v35 = vld [vmem:[%s3471_s2 + $0xc0] sm:$0xff]   ;;  %v2445_v49 = vld [vmem:[%s3471_s2 + $0x1f8] sm:$0xff]  }
  0x66   :  { %2274 = vmatprep.subr.bf16.mxu0 %v2417_v12  ;;  %v2432_v32 = vld [vmem:[%s3471_s2 + $0x88] sm:$0xff]   ;;  %v2436_v37 = vld [vmem:[%s3469_s0] ss:$16 sps:$4 sm:$0xff]   ;;  %v2442_v43 = vld [vmem:[%s3469_s0 + $0x4] ss:$16 sps:$4 sm:$0xff]  }
  0x67   :  { %2295 = vmatpush3.bf16.msra.mxu1 %v2416_v11  ;;  %v2438_v38 = vld [vmem:[%s3469_s0 + $0x20] ss:$16 sps:$4 sm:$0xff]   ;;  %v157_v40 = vrot.slane %v2436_v37, %v3017_v36  ;;  %v2443_v44 = vld [vmem:[%s3469_s0 + $0x24] ss:$16 sps:$4 sm:$0xff]   ;;  %v164_v47 = vrot.slane %v2442_v43, %v3017_v36  ;;  %v2444_v52 = vld [vmem:[%s3471_s2 + $0x138] sm:$0xff]  }
  0x68   :  { %2296 = vmatprep.subr.bf16.mxu1 %v2419_v14  ;;  %v2440_v39 = vld [vmem:[%s3471_s2 + $0x80] sm:$0xff]   ;;  %v171_v41 = vrot.slane %v2438_v38, %v3017_v36  ;;  %v178_v48 = vrot.slane %v2443_v44, %v3017_v36  ;;  %v2447_v55 = vld [vmem:[%s3471_s2 + $0x170] sm:$0xff]   ;;  %v2446_v56 = vld [vmem:[%s3471_s2 + $0x1b8] sm:$0xff]  }
  0x69   :  { %2275 = vmatpush3.bf16.msra.mxu0 %v2418_v13  ;;  %v2448_v59 = vld [vmem:[%s3471_s2 + $0x130] sm:$0xff]   ;;  %v2451_v61 = vld [vmem:[%s3471_s2 + $0x168] sm:$0xff]   ;;  %v2455_v1 = vld [vmem:[%s3471_s2 + $0x160] sm:$0xff]  }
  0x6a   :  { %2276 = vmatprep.subr.bf16.mxu0 %v2421_v16  ;;  %v180_v45 = vcombine.high %v157_v40, %v171_v41  ;;  %v179_v46 = vcombine.low %v157_v40, %v171_v41  ;;  %v182_v53 = vcombine.high %v164_v47, %v178_v48  ;;  %v181_v54 = vcombine.low %v164_v47, %v178_v48  ;;  %v2449_v60 = vld [vmem:[%s3471_s2 + $0x1f0] sm:$0xff]   ;;  %v2452_v63 = vld [vmem:[%s3471_s2 + $0x128] sm:$0xff]   ;;  %v2456_v3 = vld [vmem:[%s3471_s2 + $0x120] sm:$0xff]  }
  0x6b   :  { %2297 = vmatpush3.bf16.msra.mxu1 %v2420_v15  ;;  %v2450_v62 = vld [vmem:[%s3471_s2 + $0x1b0] sm:$0xff]   ;;  %v2453_v0 = vld [vmem:[%s3471_s2 + $0x1e8] sm:$0xff]   ;;  %v2457_v4 = vld [vmem:[%s3471_s2 + $0x1e0] sm:$0xff]  }
  0x6c   :  { %2298 = vmatprep.subr.bf16.mxu1 %v2423_v18  ;;  %v228_v50 = vpack.c.bf16 %v180_v45, %v180_v45  ;;  %v227_v51 = vpack.c.bf16 %v179_v46, %v179_v46  ;;  %v230_v57 = vpack.c.bf16 %v182_v53, %v182_v53  ;;  %v229_v58 = vpack.c.bf16 %v181_v54, %v181_v54  ;;  %v2454_v2 = vld [vmem:[%s3471_s2 + $0x1a8] sm:$0xff]   ;;  %v2459_v5 = vld [vmem:[%s3471_s2 + $0x158] sm:$0xff]   ;;  %v2458_v6 = vld [vmem:[%s3471_s2 + $0x1a0] sm:$0xff]  }
  0x6d   :  { %2277 = vmatpush3.bf16.msra.mxu0 %v2422_v17  ;;  %v2460_v7 = vld [vmem:[%s3471_s2 + $0x118] sm:$0xff]   ;;  %v2463_v9 = vld [vmem:[%s3471_s2 + $0x150] sm:$0xff]   ;;  %v2467_v13 = vld [vmem:[%s3471_s2 + $0x148] sm:$0xff]  }
  0x6e   :  { %2278 = vmatprep.subr.bf16.mxu0 %v2425_v20  ;;  %788 = vmatprep.mubr.bf16.mxu0 %v228_v50  ;;  %v2461_v8 = vld [vmem:[%s3471_s2 + $0x1d8] sm:$0xff]   ;;  %v2464_v11 = vld [vmem:[%s3471_s2 + $0x110] sm:$0xff]   ;;  %v2468_v15 = vld [vmem:[%s3471_s2 + $0x108] sm:$0xff]  }
  0x6f   :  { %2299 = vmatpush3.bf16.msra.mxu1 %v2424_v19  ;;  %828 = vmatprep.mubr.bf16.mxu1 %v230_v57  ;;  %v2462_v10 = vld [vmem:[%s3471_s2 + $0x198] sm:$0xff]   ;;  %v2465_v12 = vld [vmem:[%s3471_s2 + $0x1d0] sm:$0xff]   ;;  %v2469_v16 = vld [vmem:[%s3471_s2 + $0x1c8] sm:$0xff]  }
  0x70   :  { %2300 = vmatprep.subr.bf16.mxu1 %v2427_v22  ;;  %v2466_v14 = vld [vmem:[%s3471_s2 + $0x190] sm:$0xff]   ;;  %v2470_v17 = vld [vmem:[%s3471_s2 + $0x188] sm:$0xff]   ;;  %v2471_v18 = vld [vmem:[%s3471_s2 + $0x140] sm:$0xff]  }
  0x71   :  { %2279 = vmatpush3.bf16.msra.mxu0 %v2426_v21  ;;  %v2472_v19 = vld [vmem:[%s3471_s2 + $0x100] sm:$0xff]   ;;  %v2474_v21 = vld [vmem:[%s3469_s0 + $0x8] ss:$16 sps:$4 sm:$0xff]   ;;  %v2479_v23 = vld [vmem:[%s3469_s0 + $0xc] ss:$16 sps:$4 sm:$0xff]  }
  0x72   :  { %2280 = vmatprep.subr.bf16.mxu0 %v2429_v27  ;;  %v2473_v20 = vld [vmem:[%s3471_s2 + $0x1c0] sm:$0xff]   ;;  %v2476_v22 = vld [vmem:[%s3469_s0 + $0x28] ss:$16 sps:$4 sm:$0xff]   ;;  %v193_v24 = vrot.slane %v2474_v21, %v3017_v36  ;;  %v2480_v27 = vld [vmem:[%s3469_s0 + $0x2c] ss:$16 sps:$4 sm:$0xff]  }
  0x73   :  { %2301 = vmatpush3.bf16.msra.mxu1 %v2428_v26  ;;  %v207_v25 = vrot.slane %v2476_v22, %v3017_v36  ;;  %v2478_v26 = vld [vmem:[%s3471_s2 + $0x180] sm:$0xff]   ;;  %v2147_v21 = vld [vmem:[#allocation8] ss:$0 sm:$0xff] }
  0x74   :  { %2302 = vmatprep.subr.bf16.mxu1 %v2431_v29  ;;  %v200_v29 = vrot.slane %v2479_v23, %v3017_v36  ;;  %v235_v43 = vld [vmem:[#allocation2] sm:$0xff] }
  0x75   :  { %2281 = vmatpush3.bf16.msra.mxu0 %v2430_v28  ;;  %v916_v28 = vld [vmem:[#allocation7] sm:$0xf]  ;;  %v216_v30 = vcombine.high %v193_v24, %v207_v25  ;;  %v236_v44 = vpack.c.bf16 %v235_v43, %v235_v43  ;;  %v2483_v45 = vld [vmem:[%s3475_s6 + $0x64] ss:$16 sps:$4 sm:$0xff]   ;;  %v2484_v46 = vld [vmem:[%s3476_s7 + $0x60] ss:$16 sps:$4 sm:$0xff]  }
  0x76   :  { %2282 = vmatprep.subr.bf16.mxu0 %v2433_v33  ;;  %v2823_v33 = vmov 0.0   ;;  %v930_v40 = vsel %vm928_vm0, %v916_v28, 0  ;;  %v2486_v47 = vld [vmem:[%s3476_s7 + $0x64] ss:$16 sps:$4 sm:$0xff]   ;;  %v2493_v53 = vld [vmem:[%s3475_s6 + $0x20] ss:$16 sps:$4 sm:$0xff]  }
  0x77   :  { %2303 = vmatpush3.bf16.msra.mxu1 %v2432_v32  ;;  %v215_v32 = vcombine.low %v193_v24, %v207_v25  ;;  %v2489_v48 = vld [vmem:[%s3475_s6 + $0x44] ss:$16 sps:$4 sm:$0xff]   ;;  %v2499_v57 = vld [vmem:[%s3475_s6] ss:$16 sps:$4 sm:$0xff]  }
  0x78   :  { %2304 = vmatprep.subr.bf16.mxu1 %v2435_v35  ;;  %v232_v35 = vpack.c.bf16 %v216_v30, %v216_v30  ;;  %v2492_v50 = vld [vmem:[%s3476_s7 + $0x44] ss:$16 sps:$4 sm:$0xff]  }
  0x79   :  { %2283 = vmatpush3.bf16.msra.mxu0 %v2434_v34  ;;  %v214_v34 = vrot.slane %v2480_v27, %v3017_v36  ;;  %v231_v37 = vpack.c.bf16 %v215_v32, %v215_v32  ;;  %v2481_v36 = vld [vmem:[%s3475_s6 + $0x60] ss:$16 sps:$4 sm:$0xff]   ;;  %v2498_v54 = vld [vmem:[%s3476_s7 + $0x24] ss:$16 sps:$4 sm:$0xff]   ;;  %v2505_v32 = vld [vmem:[%s3476_s7 + $0x68] ss:$16 sps:$4 sm:$0xff]  }
  0x7a   :  { %2312 = vmatprep.subr.bf16.mxu0 %v2441_v42  ;;  %v2540_v43 = vld [vmem:[%s3478_s9 + $0x44] ss:$8 sps:$4 sm:$0xff]  }
  0x7b   :  { %2305 = vmatpush3.bf16.msra.mxu1 %v2440_v39  ;;  %v218_v38 = vcombine.high %v200_v29, %v214_v34  ;;  %v217_v39 = vcombine.low %v200_v29, %v214_v34  ;;  %v2534_v29 = vld [vmem:[%s3478_s9 + $0x64] ss:$8 sps:$4 sm:$0xff]  }
  0x7c   :  { %2334 = vmatprep.subr.bf16.mxu1 %v2445_v49  ;;  %789 = vmatmul.mubr.bf16.vlgmr.msra.gmra.mxu0 %v227_v51  ;;  %v2487_v49 = vld [vmem:[%s3475_s6 + $0x40] ss:$16 sps:$4 sm:$0xff]   ;;  %v2510_v34 = vld [vmem:[%s3476_s7 + $0x4c] ss:$16 sps:$4 sm:$0xff]  }
  0x7d   :  { %2313 = vmatpush3.bf16.msra.mxu0 %v2444_v52  ;;  %868 = vmatprep.mubr.bf16.mxu0 %v232_v35  ;;  %v234_v41 = vpack.c.bf16 %v218_v38, %v218_v38  ;;  %v233_v42 = vpack.c.bf16 %v217_v39, %v217_v39  ;;  %v2490_v51 = vld [vmem:[%s3476_s7 + $0x40] ss:$16 sps:$4 sm:$0xff]   ;;  %v2495_v52 = vld [vmem:[%s3475_s6 + $0x24] ss:$16 sps:$4 sm:$0xff]  }
  0x7e   :  { %2314 = vmatprep.subr.bf16.mxu0 %v2447_v55  ;;  %829 = vmatmul.mubr.bf16.vlgmr.msra.gmra.mxu1 %v229_v58  ;;  %v2496_v55 = vld [vmem:[%s3476_s7 + $0x20] ss:$16 sps:$4 sm:$0xff]   ;;  %v2504_v58 = vld [vmem:[%s3476_s7 + $0x4] ss:$16 sps:$4 sm:$0xff]  }
  0x7f   :  { %2335 = vmatpush3.bf16.msra.mxu1 %v2446_v56  ;;  %908 = vmatprep.mubr.bf16.mxu1 %v234_v41  ;;  %v2501_v56 = vld [vmem:[%s3475_s6 + $0x4] ss:$16 sps:$4 sm:$0xff]   ;;  %v2513_v41 = vld [vmem:[%s3476_s7 + $0x2c] ss:$16 sps:$4 sm:$0xff]  }
  0x80   :  { %2336 = vmatprep.subr.bf16.mxu1 %v2449_v60  ;;  %v2825_v60 = vmov 0   ;;  %v2537_v38 = vld [vmem:[%s3478_s9 + $0x54] ss:$8 sps:$4 sm:$0xff]  }
  0x81   :  { %2315 = vmatpush3.bf16.msra.mxu0 %v2448_v59  ;;  %v2502_v59 = vld [vmem:[%s3476_s7] ss:$16 sps:$4 sm:$0xff]  }
  0x82   :  { %2316 = vmatprep.subr.bf16.mxu0 %v2451_v61  ;;  %v2507_v61 = vld [vmem:[%s3476_s7 + $0x6c] ss:$16 sps:$4 sm:$0xff]  }
  0x83   :  { %2337 = vmatpush3.bf16.msra.mxu1 %v2450_v62  ;;  %v2531_v62 = vld [vmem:[%s3478_s9 + $0x74] ss:$8 sps:$4 sm:$0xff]  }
  0x84   :  { %2338 = vmatprep.subr.bf16.mxu1 %v2453_v0 }
  0x85   :  { %2317 = vmatpush3.bf16.msra.mxu0 %v2452_v63 }
  0x86   :  { %2318 = vmatprep.subr.bf16.mxu0 %v2455_v1 }
  0x87   :  { %2339 = vmatpush3.bf16.msra.mxu1 %v2454_v2 }
  0x88   :  { %2340 = vmatprep.subr.bf16.mxu1 %v2457_v4 }
  0x89   :  { %2319 = vmatpush3.bf16.msra.mxu0 %v2456_v3 }
  0x8a   :  { %2320 = vmatprep.subr.bf16.mxu0 %v2459_v5 }
  0x8b   :  { %2341 = vmatpush3.bf16.msra.mxu1 %v2458_v6 }
  0x8c   :  { %2342 = vmatprep.subr.bf16.mxu1 %v2461_v8  ;;  %v2082_v8 = vld [vmem:[#allocation5] ss:$0 sm:$0xff] }
  0x8d   :  { %2321 = vmatpush3.bf16.msra.mxu0 %v2460_v7 }
  0x8e   :  { %2322 = vmatprep.subr.bf16.mxu0 %v2463_v9 }
  0x8f   :  { %2343 = vmatpush3.bf16.msra.mxu1 %v2462_v10 }
  0x90   :  { %2344 = vmatprep.subr.bf16.mxu1 %v2465_v12 }
  0x91   :  { %2323 = vmatpush3.bf16.msra.mxu0 %v2464_v11 }
  0x92   :  { %2324 = vmatprep.subr.bf16.mxu0 %v2467_v13 }
  0x93   :  { %2345 = vmatpush3.bf16.msra.mxu1 %v2466_v14 }
  0x94   :  { %2346 = vmatprep.subr.bf16.mxu1 %v2469_v16 }
  0x95   :  { %2325 = vmatpush3.bf16.msra.mxu0 %v2468_v15 }
  0x96   :  { %2326 = vmatprep.subr.bf16.mxu0 %v2471_v18 }
  0x97   :  { %2347 = vmatpush3.bf16.msra.mxu1 %v2470_v17 }
  0x98   :  { %2348 = vmatprep.subr.bf16.mxu1 %v2473_v20 }
  0x99   :  { %2327 = vmatpush3.bf16.msra.mxu0 %v2472_v19 }
  0x9a   :  { %2380 = vmatprep.subr.bf16.mxu0 %v2823_v33 }
  0x9b   :  { %2349 = vmatpush3.bf16.msra.mxu1 %v2478_v26  ;;  %v2529_v26 = vld [vmem:[%s3478_s9 + $0x70] ss:$8 sps:$4 sm:$0xff]  }
  0x9c   :  { %869 = vmatmul.mubr.bf16.vlgmr.msra.gmra.mxu0 %v231_v37  ;;  %1263 = vmatprep.subr.bf16.mxu1 %v2483_v45  ;;  %v2532_v37 = vld [vmem:[%s3478_s9 + $0x60] ss:$8 sps:$4 sm:$0xff]  }
  0x9d   :  { %2381 = vmatpush3.bf16.msra.mxu0 %v930_v40  ;;  %2382 = vmatprep.mubr.msk.bf16.mxu0 %vm2824_vm1, %v2823_v33  ;;  %v2508_v40 = vld [vmem:[%s3476_s7 + $0x48] ss:$16 sps:$4 sm:$0xff]  }
  0x9e   :  { %909 = vmatmul.mubr.bf16.vlgmr.msra.gmra.mxu1 %v233_v42  ;;  %1098 = vmatprep.subr.bf16.mxu0 %v2486_v47  ;;  %v2535_v42 = vld [vmem:[%s3478_s9 + $0x50] ss:$8 sps:$4 sm:$0xff]   ;;  %v2538_v45 = vld [vmem:[%s3478_s9 + $0x40] ss:$8 sps:$4 sm:$0xff]  }
  0x9f   :  { %1264 = vmatpush1.bf16.msra.mxu1 %v2481_v36  ;;  %1287 = vmatprep.mubr.bf16.mxu1 %v2825_v60  ;;  %v2516_v36 = vld [vmem:[%s3476_s7 + $0xc] ss:$16 sps:$4 sm:$0xff]   ;;  %v2514_v47 = vld [vmem:[%s3476_s7 + $0x8] ss:$16 sps:$4 sm:$0xff]  }
  0xa0   :  { %1265 = vmatprep.subr.bf16.mxu1 %v2489_v48  ;;  %v2519_v48 = vld [vmem:[%s3475_s6 + $0x6c] ss:$16 sps:$4 sm:$0xff]  }
  0xa3   :  { %1266 = vmatpush1.bf16.msra.mxu1 %v2487_v49  ;;  %v2541_v49 = vld [vmem:[%s3478_s9 + $0x30] ss:$8 sps:$4 sm:$0xff]  }
  0xa4   :  { %2383 = vmatmul.mubr.msk.bf16.vlgmr.msra.gmra.mxu0 %vm924_vm2, %v236_v44  ;;  %1267 = vmatprep.subr.bf16.mxu1 %v2495_v52  ;;  %v2511_v44 = vld [vmem:[%s3476_s7 + $0x28] ss:$16 sps:$4 sm:$0xff]   ;;  %v2522_v52 = vld [vmem:[%s3475_s6 + $0x4c] ss:$16 sps:$4 sm:$0xff]  }
  0xa5   :  { %1099 = vmatpush1.bf16.msra.mxu0 %v2484_v46  ;;  %1122 = vmatprep.mubr.bf16.mxu0 %v2825_v60  ;;  %v2543_v46 = vld [vmem:[%s3478_s9 + $0x34] ss:$8 sps:$4 sm:$0xff]  }
  0xa6   :  { %1100 = vmatprep.subr.bf16.mxu0 %v2492_v50  ;;  %v2546_v50 = vld [vmem:[%s3478_s9 + $0x24] ss:$8 sps:$4 sm:$0xff]  }
  0xa7   :  { %1268 = vmatpush1.bf16.msra.mxu1 %v2493_v53  ;;  %v2544_v53 = vld [vmem:[%s3478_s9 + $0x20] ss:$8 sps:$4 sm:$0xff]  }
  0xa8   :  { %1269 = vmatprep.subr.bf16.mxu1 %v2501_v56  ;;  %v2525_v56 = vld [vmem:[%s3475_s6 + $0x2c] ss:$16 sps:$4 sm:$0xff]  }
  0xa9   :  { %1101 = vmatpush1.bf16.msra.mxu0 %v2490_v51  ;;  %v2517_v51 = vld [vmem:[%s3475_s6 + $0x68] ss:$16 sps:$4 sm:$0xff]  }
  0xaa   :  { %1102 = vmatprep.subr.bf16.mxu0 %v2498_v54  ;;  %v2549_v54 = vld [vmem:[%s3478_s9 + $0x14] ss:$8 sps:$4 sm:$0xff]  }
  0xab   :  { %1270 = vmatpush1.bf16.msra.mxu1 %v2499_v57  ;;  %v2547_v57 = vld [vmem:[%s3478_s9 + $0x10] ss:$8 sps:$4 sm:$0xff]  }
  0xac   :  { %1767 = vmatprep.subr.bf16.mxu1 %v2531_v62  ;;  %v2558_v62 = vld [vmem:[%s3478_s9 + $0xf4] ss:$8 sps:$4 sm:$0xff]  }
  0xad   :  { %1103 = vmatpush1.bf16.msra.mxu0 %v2496_v55  ;;  %v2520_v55 = vld [vmem:[%s3475_s6 + $0x48] ss:$16 sps:$4 sm:$0xff]  }
  0xae   :  { %1104 = vmatprep.subr.bf16.mxu0 %v2504_v58  ;;  %v2552_v58 = vld [vmem:[%s3478_s9 + $0x4] ss:$8 sps:$4 sm:$0xff]  }
  0xb1   :  { %1105 = vmatpush1.bf16.msra.mxu0 %v2502_v59  ;;  %v2523_v59 = vld [vmem:[%s3475_s6 + $0x28] ss:$16 sps:$4 sm:$0xff]  }
  0xb2   :  { %1139 = vmatprep.subr.bf16.mxu0 %v2507_v61  ;;  %v2550_v61 = vld [vmem:[%s3478_s9] ss:$8 sps:$4 sm:$0xff]  }
 0x13c   :  { %v2284_v63 = vpop.f32.mrf.mxu0 }
 0x13e   :  { %v2285_v0 = vpop.f32.mrf.mxu0  ;;  %v2306_v1 = vpop.f32.mrf.mxu1 }
 0x13f   :  { %v2286_v7 = vadd.f32 %v2285_v0, %v2284_v63  ;;  %v2526_v63 = vld [vmem:[%s3475_s6 + $0x8] ss:$16 sps:$4 sm:$0xff]   ;;  %v2555_v0 = vld [vmem:[%s3478_s9 + $0x174] ss:$8 sps:$4 sm:$0xff]  }
 0x140   :  { %v2287_v2 = vpop.f32.mrf.mxu0  ;;  %v2307_v3 = vpop.f32.mrf.mxu1 }
 0x141   :  { %v791_v9 = vadd.f32 %v2286_v7, %v2082_v8  ;;  %v2308_v10 = vadd.f32 %v2307_v3, %v2306_v1  ;;  %v2556_v1 = vld [vmem:[%s3478_s9 + $0xf0] ss:$8 sps:$4 sm:$0xff]   ;;  %v2564_v2 = vld [vmem:[%s3478_s9 + $0xe4] ss:$8 sps:$4 sm:$0xff]   ;;  %v2559_v7 = vld [vmem:[%s3478_s9 + $0x160] ss:$8 sps:$4 sm:$0xff]  }
 0x142   :  { %v2288_v4 = vpop.f32.mrf.mxu0  ;;  %v2309_v5 = vpop.f32.mrf.mxu1  ;;  %v2553_v3 = vld [vmem:[%s3478_s9 + $0x170] ss:$8 sps:$4 sm:$0xff]   ;;  %v2567_v8 = vld [vmem:[%s3478_s9 + $0x154] ss:$8 sps:$4 sm:$0xff]  }
 0x143   :  { %v831_v14 = vadd.f32 %v2308_v10, %v791_v9  ;;  %v2561_v4 = vld [vmem:[%s3478_s9 + $0x164] ss:$8 sps:$4 sm:$0xff]   ;;  %v2562_v5 = vld [vmem:[%s3478_s9 + $0xe0] ss:$8 sps:$4 sm:$0xff]   ;;  %v2568_v9 = vld [vmem:[%s3478_s9 + $0xd0] ss:$8 sps:$4 sm:$0xff]  }
 0x144   :  { %v2310_v6 = vpop.f32.mrf.mxu1  ;;  %v2576_v10 = vld [vmem:[%s3478_s9 + $0xc4] ss:$8 sps:$4 sm:$0xff]  }
 0x145   :  { %v2570_v6 = vld [vmem:[%s3478_s9 + $0xd4] ss:$8 sps:$4 sm:$0xff]  }
 0x15c   :  { %v2328_v11 = vpop.f32.mrf.mxu0 }
 0x15e   :  { %v2329_v12 = vpop.f32.mrf.mxu0  ;;  %v2350_v13 = vpop.f32.mrf.mxu1 }
 0x15f   :  { %v2330_v15 = vadd.f32 %v2329_v12, %v2328_v11  ;;  %v2565_v11 = vld [vmem:[%s3478_s9 + $0x150] ss:$8 sps:$4 sm:$0xff]   ;;  %v2573_v12 = vld [vmem:[%s3478_s9 + $0x144] ss:$8 sps:$4 sm:$0xff]  }
 0x160   :  { %v2331_v16 = vpop.f32.mrf.mxu0  ;;  %v2351_v17 = vpop.f32.mrf.mxu1 }
 0x161   :  { %v871_v18 = vadd.f32 %v2330_v15, %v831_v14  ;;  %v2352_v19 = vadd.f32 %v2351_v17, %v2350_v13  ;;  %v2574_v13 = vld [vmem:[%s3478_s9 + $0xc0] ss:$8 sps:$4 sm:$0xff]   ;;  %v2582_v14 = vld [vmem:[%s3478_s9 + $0xb4] ss:$8 sps:$4 sm:$0xff]   ;;  %v2580_v17 = vld [vmem:[%s3478_s9 + $0xb0] ss:$8 sps:$4 sm:$0xff]  }
 0x162   :  { %v2332_v20 = vpop.f32.mrf.mxu0  ;;  %v2353_v22 = vpop.f32.mrf.mxu1  ;;  %v2571_v15 = vld [vmem:[%s3478_s9 + $0x140] ss:$8 sps:$4 sm:$0xff]   ;;  %v2579_v16 = vld [vmem:[%s3478_s9 + $0x134] ss:$8 sps:$4 sm:$0xff]  }
 0x163   :  { %v911_v23 = vadd.f32 %v2352_v19, %v871_v18  ;;  %v2577_v18 = vld [vmem:[%s3478_s9 + $0x130] ss:$8 sps:$4 sm:$0xff]   ;;  %v2583_v19 = vld [vmem:[%s3478_s9 + $0x120] ss:$8 sps:$4 sm:$0xff]   ;;  %v2585_v20 = vld [vmem:[%s3478_s9 + $0x124] ss:$8 sps:$4 sm:$0xff]  }
 0x164   :  { %v966_v24 = vpop.f32.mrf.mxu0  ;;  %v2354_v25 = vpop.f32.mrf.mxu1  ;;  %v2586_v22 = vld [vmem:[%s3478_s9 + $0xa0] ss:$8 sps:$4 sm:$0xff]  }
 0x165   :  { %v3209_v27 = vpack.c.bf16 %v911_v23, %v911_v23  ;;  %v967_v28 = vadd.f32 %v2147_v21, %v966_v24  ;;  %v2588_v21 = vld [vmem:[%s3478_s9 + $0xa4] ss:$8 sps:$4 sm:$0xff]   ;;  %v2591_v23 = vld [vmem:[%s3478_s9 + $0x114] ss:$8 sps:$4 sm:$0xff]   ;;  %v2589_v24 = vld [vmem:[%s3478_s9 + $0x110] ss:$8 sps:$4 sm:$0xff]  }
 0x166   :  { %v2384_v30 = vpop.f32.mrf.mxu0  ;;  %v2594_v25 = vld [vmem:[%s3478_s9 + $0x94] ss:$8 sps:$4 sm:$0xff]  }
 0x167   :  { %v989_v33 = vpack.c.bf16 %v967_v28, %v967_v28  ;;  %2183 = vmatmul.mubr.msk.bf16.vlgmr.msra.gmra.mxu1 %vm1086_vm3, %v3209_v27  ;;  %v2595_v28 = vld [vmem:[%s3478_s9 + $0x100] ss:$8 sps:$4 sm:$0xff]  }
 0x168   :  { %v969_v35 = vpop.f32.mrf.mxu0  ;;  %1768 = vmatpush1.bf16.msra.mxu1 %v2529_v26  ;;  %v2592_v26 = vld [vmem:[%s3478_s9 + $0x90] ss:$8 sps:$4 sm:$0xff]   ;;  %v2598_v30 = vld [vmem:[%s3478_s9 + $0x80] ss:$8 sps:$4 sm:$0xff]  }
 0x169   :  { %2165 = vmatmul.mubr.msk.bf16.vlgmr.msra.gmra.mxu0 %vm1086_vm3, %v989_v33  ;;  %1769 = vmatprep.subr.bf16.mxu1 %v2534_v29  ;;  %v2600_v29 = vld [vmem:[%s3478_s9 + $0x84] ss:$8 sps:$4 sm:$0xff]   ;;  %v2604_v35 = vld [vmem:[%s3478_s9 + $0x1e0] ss:$8 sps:$4 sm:$0xff]  }
 0x16a   :  { %1140 = vmatpush1.bf16.msra.mxu0 %v2505_v32  ;;  %v2385_v39 = vpop.f32.mrf.mxu0  ;;  %1163 = vmatprep.mubr.bf16.mxu0 %v2825_v60  ;;  %v2603_v32 = vld [vmem:[%s3478_s9 + $0x1f4] ss:$8 sps:$4 sm:$0xff]  }
 0x16b   :  { %1141 = vmatprep.subr.bf16.mxu0 %v2510_v34  ;;  %v2606_v34 = vld [vmem:[%s3478_s9 + $0x1e4] ss:$8 sps:$4 sm:$0xff]   ;;  %v2610_v39 = vld [vmem:[%s3478_s9 + $0x1c0] ss:$8 sps:$4 sm:$0xff]  }
 0x16c   :  { %1770 = vmatpush1.bf16.msra.mxu1 %v2532_v37  ;;  %v2609_v37 = vld [vmem:[%s3478_s9 + $0x1d4] ss:$8 sps:$4 sm:$0xff]  }
 0x16d   :  { %1771 = vmatprep.subr.bf16.mxu1 %v2537_v38  ;;  %v2607_v38 = vld [vmem:[%s3478_s9 + $0x1d0] ss:$8 sps:$4 sm:$0xff]  }
 0x16e   :  { %1142 = vmatpush1.bf16.msra.mxu0 %v2508_v40  ;;  %v2612_v40 = vld [vmem:[%s3478_s9 + $0x1c4] ss:$8 sps:$4 sm:$0xff]  }
 0x16f   :  { %1143 = vmatprep.subr.bf16.mxu0 %v2513_v41  ;;  %v2615_v41 = vld [vmem:[%s3478_s9 + $0x1b4] ss:$8 sps:$4 sm:$0xff]  }
 0x170   :  { %1772 = vmatpush1.bf16.msra.mxu1 %v2535_v42  ;;  %v2613_v42 = vld [vmem:[%s3478_s9 + $0x1b0] ss:$8 sps:$4 sm:$0xff]  }
 0x171   :  { %1773 = vmatprep.subr.bf16.mxu1 %v2540_v43  ;;  %v2618_v43 = vld [vmem:[%s3478_s9 + $0x1a4] ss:$8 sps:$4 sm:$0xff]  }
 0x172   :  { %1144 = vmatpush1.bf16.msra.mxu0 %v2511_v44  ;;  %v2616_v44 = vld [vmem:[%s3478_s9 + $0x1a0] ss:$8 sps:$4 sm:$0xff]  }
 0x173   :  { %1145 = vmatprep.subr.bf16.mxu0 %v2516_v36  ;;  %v2621_v36 = vld [vmem:[%s3478_s9 + $0x194] ss:$8 sps:$4 sm:$0xff]  }
 0x174   :  { %1774 = vmatpush1.bf16.msra.mxu1 %v2538_v45  ;;  %v2619_v45 = vld [vmem:[%s3478_s9 + $0x190] ss:$8 sps:$4 sm:$0xff]  }
 0x175   :  { %1775 = vmatprep.subr.bf16.mxu1 %v2543_v46  ;;  %v2624_v46 = vld [vmem:[%s3478_s9 + $0x184] ss:$8 sps:$4 sm:$0xff]  }
 0x176   :  { %1146 = vmatpush1.bf16.msra.mxu0 %v2514_v47  ;;  %v2622_v47 = vld [vmem:[%s3478_s9 + $0x180] ss:$8 sps:$4 sm:$0xff]  }
 0x177   :  { %1304 = vmatprep.subr.bf16.mxu0 %v2519_v48  ;;  %v1341_v48 = vsub.s32 0, %v3002_v31 }
 0x178   :  { %1776 = vmatpush1.bf16.msra.mxu1 %v2541_v49  ;;  %v1337_v49 = vld [vmem:[#allocation10] sm:$0xf] }
 0x179   :  { %2166 = vmatmul.mubr.msk.bf16.vlgmr.msra.gmra.mxu0 %vm1086_vm3, %v989_v33  ;;  %1777 = vmatprep.subr.bf16.mxu1 %v2546_v50  ;;  %v2601_v33 = vld [vmem:[%s3478_s9 + $0x1f0] ss:$8 sps:$4 sm:$0xff]   ;;  %v1345_v50 = vsub.s32 1, %v3002_v31 }
 0x17a   :  { %1305 = vmatpush1.bf16.msra.mxu0 %v2517_v51  ;;  %1328 = vmatprep.mubr.bf16.mxu0 %v2825_v60  ;;  %v2528_v60 = vld [vmem:[%s3475_s6 + $0xc] ss:$16 sps:$4 sm:$0xff]  }
 0x17b   :  { %1306 = vmatprep.subr.bf16.mxu0 %v2522_v52  ;;  %v1342_v52 = vrot.slane %v1337_v49, %v1341_v48 }
 0x17c   :  { %1778 = vmatpush1.bf16.msra.mxu1 %v2544_v53 }
 0x17d   :  { %1779 = vmatprep.subr.bf16.mxu1 %v2549_v54 }
 0x17e   :  { %1307 = vmatpush1.bf16.msra.mxu0 %v2520_v55 }
 0x17f   :  { %1308 = vmatprep.subr.bf16.mxu0 %v2525_v56  ;;  %v1346_v56 = vrot.slane %v1337_v49, %v1345_v50 }
 0x180   :  { %1780 = vmatpush1.bf16.msra.mxu1 %v2547_v57 }
 0x181   :  { %1781 = vmatprep.subr.bf16.mxu1 %v2552_v58 }
 0x182   :  { %1309 = vmatpush1.bf16.msra.mxu0 %v2523_v59 }
 0x183   :  { %1310 = vmatprep.subr.bf16.mxu0 %v2528_v60 }
 0x184   :  { %1782 = vmatpush1.bf16.msra.mxu1 %v2550_v61 }
 0x185   :  { %1783 = vmatprep.subr.bf16.mxu1 %v2558_v62 }
 0x186   :  { %1311 = vmatpush1.bf16.msra.mxu0 %v2526_v63 }
 0x187   :  { %1808 = vmatprep.subr.bf16.mxu0 %v2555_v0 }
 0x188   :  { %1784 = vmatpush2.bf16.msra.mxu1 %v2556_v1 }
 0x189   :  { %2184 = vmatmul.mubr.msk.bf16.vlgmr.msra.gmra.mxu0 %vm1086_vm3, %v3209_v27  ;;  %1785 = vmatprep.subr.bf16.mxu1 %v2564_v2  ;;  %v2597_v27 = vld [vmem:[%s3478_s9 + $0x104] ss:$8 sps:$4 sm:$0xff]  }
 0x18a   :  { %1809 = vmatpush1.bf16.msra.mxu0 %v2553_v3 }
 0x18b   :  { %1810 = vmatprep.subr.bf16.mxu0 %v2561_v4 }
 0x18c   :  { %1786 = vmatpush2.bf16.msra.mxu1 %v2562_v5 }
 0x18d   :  { %1787 = vmatprep.subr.bf16.mxu1 %v2570_v6 }
 0x18e   :  { %1811 = vmatpush1.bf16.msra.mxu0 %v2559_v7 }
 0x18f   :  { %1812 = vmatprep.subr.bf16.mxu0 %v2567_v8 }
 0x190   :  { %1788 = vmatpush2.bf16.msra.mxu1 %v2568_v9  ;;  %v1349_v9 = vsub.s32 2, %v3002_v31 }
 0x191   :  { %1789 = vmatprep.subr.bf16.mxu1 %v2576_v10  ;;  %v1353_v10 = vsub.s32 3, %v3002_v31 }
 0x192   :  { %1813 = vmatpush1.bf16.msra.mxu0 %v2565_v11  ;;  %v1350_v11 = vrot.slane %v1337_v49, %v1349_v9 }
 0x193   :  { %1814 = vmatprep.subr.bf16.mxu0 %v2573_v12 }
 0x194   :  { %1790 = vmatpush2.bf16.msra.mxu1 %v2574_v13 }
 0x195   :  { %1791 = vmatprep.subr.bf16.mxu1 %v2582_v14  ;;  %v1354_v14 = vrot.slane %v1337_v49, %v1353_v10 }
 0x196   :  { %1815 = vmatpush1.bf16.msra.mxu0 %v2571_v15 }
 0x197   :  { %1816 = vmatprep.subr.bf16.mxu0 %v2579_v16 }
 0x198   :  { %1792 = vmatpush2.bf16.msra.mxu1 %v2580_v17 }
 0x199   :  { %1793 = vmatprep.subr.bf16.mxu1 %v2588_v21 }
 0x19a   :  { %1817 = vmatpush1.bf16.msra.mxu0 %v2577_v18 }
 0x19b   :  { %1818 = vmatprep.subr.bf16.mxu0 %v2585_v20 }
 0x19c   :  { %1794 = vmatpush2.bf16.msra.mxu1 %v2586_v22 }
 0x19d   :  { %1795 = vmatprep.subr.bf16.mxu1 %v2594_v25  ;;  %v2625_v25 = vld [vmem:[#allocation11 + $0x78] sm:$0xff]  }
 0x19e   :  { %1819 = vmatpush1.bf16.msra.mxu0 %v2583_v19 }
 0x19f   :  { %1820 = vmatprep.subr.bf16.mxu0 %v2591_v23 }
 0x1a0   :  { %1796 = vmatpush2.bf16.msra.mxu1 %v2592_v26  ;;  %v2626_v26 = vld [vmem:[#allocation11 + $0x38] sm:$0xff]  }
 0x1a1   :  { %1797 = vmatprep.subr.bf16.mxu1 %v2600_v29  ;;  %v2629_v29 = vld [vmem:[#allocation11 + $0x68] sm:$0xff]  }
 0x1a2   :  { %1821 = vmatpush1.bf16.msra.mxu0 %v2589_v24 }
 0x1a3   :  { %1822 = vmatprep.subr.bf16.mxu0 %v2597_v27  ;;  %v2627_v27 = vld [vmem:[#allocation11 + $0x70] sm:$0xff]  }
 0x1a4   :  { %1798 = vmatpush2.bf16.msra.mxu1 %v2598_v30  ;;  %v2630_v30 = vld [vmem:[#allocation11 + $0x28] sm:$0xff]  }
 0x1a5   :  { %2358 = vmatprep.subr.bf16.mxu1 %v2625_v25 }
 0x1a6   :  { %1823 = vmatpush1.bf16.msra.mxu0 %v2595_v28  ;;  %v2628_v28 = vld [vmem:[#allocation11 + $0x30] sm:$0xff]  }
 0x1a7   :  { %1824 = vmatprep.subr.bf16.mxu0 %v2603_v32  ;;  %v2631_v32 = vld [vmem:[#allocation11 + $0x60] sm:$0xff]  }
 0x1aa   :  { %1825 = vmatpush2.bf16.msra.mxu0 %v2601_v33  ;;  %v2632_v33 = vld [vmem:[#allocation11 + $0x20] sm:$0xff]  }
 0x1ab   :  { %1826 = vmatprep.subr.bf16.mxu0 %v2606_v34  ;;  %v2633_v34 = vld [vmem:[#allocation11 + $0x58] sm:$0xff]  }
 0x1ae   :  { %1827 = vmatpush2.bf16.msra.mxu0 %v2604_v35  ;;  %v2634_v35 = vld [vmem:[#allocation11 + $0x18] sm:$0xff]  }
 0x1af   :  { %1828 = vmatprep.subr.bf16.mxu0 %v2609_v37  ;;  %v2635_v37 = vld [vmem:[#allocation11 + $0x50] sm:$0xff]  }
 0x1b2   :  { %1829 = vmatpush2.bf16.msra.mxu0 %v2607_v38  ;;  %v2636_v38 = vld [vmem:[#allocation11 + $0x10] sm:$0xff]  }
 0x1b3   :  { %1830 = vmatprep.subr.bf16.mxu0 %v2612_v40  ;;  %v2638_v40 = vld [vmem:[#allocation11 + $0x8] sm:$0xff]  }
 0x1b6   :  { %1831 = vmatpush2.bf16.msra.mxu0 %v2610_v39  ;;  %v2637_v39 = vld [vmem:[#allocation11 + $0x48] sm:$0xff]  }
 0x1b7   :  { %1832 = vmatprep.subr.bf16.mxu0 %v2615_v41  ;;  %v2639_v41 = vld [vmem:[#allocation11 + $0x40] sm:$0xff]  }
 0x1ba   :  { %1833 = vmatpush2.bf16.msra.mxu0 %v2613_v42  ;;  %v2640_v42 = vld [vmem:[#allocation11] sm:$0xff]  }
 0x1bb   :  { %1834 = vmatprep.subr.bf16.mxu0 %v2618_v43 }
 0x1be   :  { %1835 = vmatpush2.bf16.msra.mxu0 %v2616_v44 }
 0x1bf   :  { %1836 = vmatprep.subr.bf16.mxu0 %v2621_v36 }
 0x1c2   :  { %1837 = vmatpush2.bf16.msra.mxu0 %v2619_v45 }
 0x1c3   :  { %1838 = vmatprep.subr.bf16.mxu0 %v2624_v46  ;;  %v1435_v46 = vld [vmem:[%s3479_s10] sm:$0x3] }
 0x1c4   :  { %v1444_v49 = vrot.slane %v1435_v46, %v1345_v50 }
 0x1c6   :  { %1839 = vmatpush2.bf16.msra.mxu0 %v2622_v47  ;;  %v1440_v47 = vrot.slane %v1435_v46, %v1341_v48 }
 0x227   :  { %v1289_v51 = vpop.f32.mrf.mxu1 }
 0x229   :  { %v1124_v53 = vpop.f32.mrf.mxu0  ;;  %v1291_v54 = vpop.f32.mrf.mxu1 }
 0x22a   :  { %v1290_v55 = vadd.f32 %v1289_v51, %v1124_v53 }
 0x22b   :  { %v1126_v57 = vpop.f32.mrf.mxu0  ;;  %v1293_v58 = vpop.f32.mrf.mxu1 }
 0x22c   :  { %v1359_v59 = vadd.f32 %v1342_v52, %v1290_v55  ;;  %v1292_v60 = vadd.f32 %v1291_v54, %v1126_v57 }
 0x22d   :  { %v1128_v61 = vpop.f32.mrf.mxu0  ;;  %v1294_v62 = vpop.f32.mrf.mxu1 }
 0x22e   :  { %v1360_v63 = vadd.f32 %v1346_v56, %v1292_v60  ;;  %v1363_v0 = vmax.f32 %v1359_v59, 0.0 }
 0x22f   :  { %v1129_v1 = vpop.f32.mrf.mxu0 }
 0x230   :  { %v1364_v2 = vmax.f32 %v1360_v63, 0.0  ;;  %v1367_v4 = vpack.c.bf16 %v1363_v0, %v1363_v0  ;;  %v2826_v63 = vmov 1966171168  }
 0x231   :  { %v2031_v0 = vunpack.c.l.s4 %v2826_v63 }
 0x232   :  { %v1368_v3 = vpack.c.bf16 %v1364_v2, %v1364_v2  ;;  %v2249_v2 = vld [vmem:[#allocation13] ss:$0 sm:$0xff] }
 0x233   :  { %v2032_v1 = vunpack.c.0.s8 %v2031_v0 }
 0x234   :  { %1799 = vmatprep.mubr.bf16.mxu1 %v1368_v3 }
 0x235   :  { %1800 = vmatmul.mubr.bf16.vlgmr.msra.gmra.mxu1 %v1367_v4 }
 0x236   :  { %2359 = vmatpush3.bf16.msra.mxu1 %v2626_v26 }
 0x237   :  { %2360 = vmatprep.subr.bf16.mxu1 %v2627_v27 }
 0x239   :  { %v1165_v5 = vpop.f32.mrf.mxu0 }
 0x23a   :  { %2361 = vmatpush3.bf16.msra.mxu1 %v2628_v28 }
 0x23b   :  { %v1167_v6 = vpop.f32.mrf.mxu0  ;;  %2362 = vmatprep.subr.bf16.mxu1 %v2629_v29 }
 0x23d   :  { %v1169_v7 = vpop.f32.mrf.mxu0 }
 0x23e   :  { %2363 = vmatpush3.bf16.msra.mxu1 %v2630_v30 }
 0x23f   :  { %v1170_v8 = vpop.f32.mrf.mxu0  ;;  %2364 = vmatprep.subr.bf16.mxu1 %v2631_v32 }
 0x242   :  { %2365 = vmatpush3.bf16.msra.mxu1 %v2632_v33 }
 0x243   :  { %2366 = vmatprep.subr.bf16.mxu1 %v2633_v34 }
 0x246   :  { %2367 = vmatpush3.bf16.msra.mxu1 %v2634_v35 }
 0x247   :  { %2368 = vmatprep.subr.bf16.mxu1 %v2635_v37 }
 0x249   :  { %v1330_v12 = vpop.f32.mrf.mxu0 }
 0x24a   :  { %v1331_v13 = vadd.f32 %v1330_v12, %v1165_v5  ;;  %2369 = vmatpush3.bf16.msra.mxu1 %v2636_v38 }
 0x24b   :  { %v1332_v15 = vpop.f32.mrf.mxu0  ;;  %2370 = vmatprep.subr.bf16.mxu1 %v2637_v39 }
 0x24c   :  { %v1361_v16 = vadd.f32 %v1350_v11, %v1331_v13  ;;  %v1333_v17 = vadd.f32 %v1332_v15, %v1167_v6  ;;  %v2035_v6 = vsub.s32 %v2032_v1, %v3002_v31 }
 0x24d   :  { %v1334_v18 = vpop.f32.mrf.mxu0 }
 0x24e   :  { %v1362_v19 = vadd.f32 %v1354_v14, %v1333_v17  ;;  %v1365_v20 = vmax.f32 %v1361_v16, 0.0  ;;  %2371 = vmatpush3.bf16.msra.mxu1 %v2638_v40 }
 0x24f   :  { %v1335_v21 = vpop.f32.mrf.mxu0  ;;  %2372 = vmatprep.subr.bf16.mxu1 %v2639_v41 }
 0x250   :  { %v1366_v22 = vmax.f32 %v1362_v19, 0.0  ;;  %v1369_v24 = vpack.c.bf16 %v1365_v20, %v1365_v20 }
 0x252   :  { %v1370_v23 = vpack.c.bf16 %v1366_v22, %v1366_v22  ;;  %2373 = vmatpush3.bf16.msra.mxu1 %v2640_v42 }
 0x254   :  { %1840 = vmatprep.mubr.bf16.mxu0 %v1370_v23 }
 0x255   :  { %1841 = vmatmul.mubr.bf16.vlgmr.msra.gmra.mxu0 %v1369_v24 }
 0x2f5   :  { %v1801_v43 = vpop.f32.mrf.mxu1 }
 0x2f6   :  { %v1802_v51 = vadd.f32 %v1801_v43, %v1440_v47 }
 0x2f7   :  { %v1803_v44 = vpop.f32.mrf.mxu1 }
 0x2f8   :  { %v1804_v53 = vadd.f32 %v1803_v44, %v1444_v49 }
 0x2f9   :  { %v1805_v36 = vpop.f32.mrf.mxu1 }
 0x2fb   :  { %v1806_v45 = vpop.f32.mrf.mxu1 }
 0x315   :  { %v1842_v52 = vpop.f32.mrf.mxu0 }
 0x316   :  { %v1843_v54 = vadd.f32 %v1842_v52, %v1802_v51 }
 0x317   :  { %v1844_v55 = vpop.f32.mrf.mxu0 }
 0x318   :  { %v1845_v56 = vadd.f32 %v1844_v55, %v1804_v53  ;;  %v1849_v57 = vmax.f32 %v1843_v54, 0.0 }
 0x319   :  { %v1846_v58 = vpop.f32.mrf.mxu0 }
 0x31a   :  { %v1850_v59 = vmax.f32 %v1845_v56, 0.0  ;;  %v1851_v62 = vpack.c.bf16 %v1849_v57, %v1849_v57 }
 0x31b   :  { %v1847_v60 = vpop.f32.mrf.mxu0 }
 0x31c   :  { %v1852_v61 = vpack.c.bf16 %v1850_v59, %v1850_v59 }
 0x31e   :  { %2020 = vmatprep.mubr.bf16.mxu1 %v1852_v61 }
 0x31f   :  { %2021 = vmatmul.mubr.bf16.vlgmr.msra.gmra.mxu1 %v1851_v62 }
 0x3df   :  { %v2374_v48 = vpop.f32.mrf.mxu1 }
 0x3e1   :  { %v2375_v50 = vpop.f32.mrf.mxu1 }
 0x3e2   :  { %v2376_v3 = vadd.f32 %v2375_v50, %v2374_v48 }
 0x3e3   :  { %v2377_v4 = vpop.f32.mrf.mxu1 }
 0x3e4   :  { %v2023_v5 = vadd.f32 %v2376_v3, %v2249_v2 }
 0x3e5   :  { %v2378_v7 = vpop.f32.mrf.mxu1 }
 0x3e6   :  { %v2028_v8 = vpack.c.bf16 %v2023_v5, %v2023_v5 }
 0x3e8   :  { %v2036_v9 = vrot.slane %v2028_v8, %v2035_v6 }
 0x3ea   :  { %v2037_v10 = vcombine.high %v2036_v9, %v2036_v9  ;;  %v2044_v11 = vrot.slane %v2036_v9, %v2035_v6  ;;  %2266 = vst.sshfl [vmem:[#allocation14] sm:$0x1 pattern:$0x73625140] %v2036_v9 }
 0x3ec   :  { %v2051_v12 = vrot.slane %v2037_v10, %v2035_v6  ;;  %v2052_v13 = vcombine.high %v2044_v11, %v2044_v11  ;;  %2267 = vst.sshfl [vmem:[#allocation14 + $0x1] sm:$0x1 pattern:$0x73625140] %v2037_v10 }
 0x3ee   :  { %v2053_v14 = vcombine.high %v2051_v12, %v2051_v12  ;;  %2060 = vst [vmem:[#allocation14 + $0x2] sm:$0x1] %v2052_v13 }
 0x3f0   :  { %2061 = vst [vmem:[#allocation14 + $0x3] sm:$0x1] %v2053_v14 }
 0x3f1   :  { %2066 = vsyncadd [#allocation4], 48  ;;  %s2827_s10 = smov [#allocation14]  }
 0x3f2   :  { %s2067_s8 = sshll.u32 %s2827_s10, 4  ;;  %s2068_s8 = int_to_ptr.vmem [resolvable:$true] %s2067_s8 }
 0x3f3   :  { %s2781_s5 = scalar_lea.vmem %s2068_s8, 16  ;;  %s2785_s28 = scalar_lea.vmem %s2068_s8, 64 }
 0x3f4   :  { %p2782_p7 = scmp.ne.s32.totalorder %s2068_s8, %s2781_s5  ;;  %p2786_p8 = scmp.lt.s32.totalorder %s2068_s8, %s2068_s8 }
 0x3f5   :  { %p2787_p9 = scmp.lt.s32.totalorder %s2785_s28, %s2781_s5 }
 0x3f7   :  { %p2788_p10 = por %p2787_p9, %p2786_p8 }
 0x3f9   :  { %p2789_p11 = pnand %p2788_p10, %p2782_p7 }
 0x3fb   :  { %2792 = shalt.err (!%p2789_p11)
}
 0x3fc   :  { %s2828_s29 = smov 16   ;;  %s2829_s30 = smov 1  }
 0x3fd   :  { %2073 = dma.vmem_to_hbm [thread:$0]  %s2068_s8, 16, %s3482_s13, [#allocation4], %s2828_s29, %s2828_s29, %s2829_s30  }
 0x3fe   :  { %2809 = dma.done.wait [#allocation4], 64  }
 0x3ff   :  { %2810 = vsyncadd [#allocation4], 4294967232 }
 0x400   :  { %2077 = vsyncpa [#allocation3], 1 }
 0x401   :  { %2078 = vsyncpa [#allocation6], 1 }
 0x402   :  { %2079 = vsyncpa [#allocation9], 1 }
 0x403   :  { %2080 = vsyncpa [#allocation12], 1 }
 0x404   :  { %2081 = vsyncpa [#allocation4], 1 }

// kernel: tpu_custom_call.1
= control target key start
LH: loop header
LB: loop body
LE: loop exit
PB: predicated region body
PF: predicated region fallthrough
CT: control target
= control target key end

     0   :  { %18 = vsyncpa [#allocation3], 0  ;;  %s3469_s0 = inlined_call_operand.vmem [shape: f32[2,1024], index: 0, kind: input, shape index: {}]   ;;  %s3470_s1 = inlined_call_operand.hbm [shape: f32[2,8], index: 1, kind: input, shape index: {}]   ;;  %s3471_s2 = inlined_call_operand.vmem [shape: bf16[1024,64], index: 2, kind: input, shape index: {}]   ;;  %s3472_s3 = inlined_call_operand.hbm [shape: f32[1,64], index: 3, kind: input, shape index: {}]   ;;  %s3473_s4 = inlined_call_operand.hbm [shape: bf16[8,64], index: 4, kind: input, shape index: {}]   ;;  %s3474_s5 = inlined_call_operand.hbm [shape: f32[1,64], index: 5, kind: input, shape index: {}]   ;;  %s3475_s6 = inlined_call_operand.vmem [shape: bf16[64,512], index: 6, kind: input, shape index: {}]   ;;  %s3476_s7 = inlined_call_operand.vmem [shape: bf16[64,512], index: 7, kind: input, shape index: {}]   ;;  %s3477_s8 = inlined_call_operand.hbm [shape: f32[1,512], index: 8, kind: input, shape index: {}]   ;;  %s3478_s9 = inlined_call_operand.vmem [shape: bf16[512,256], index: 9, kind: input, shape index: {}]   ;;  %s3479_s10 = inlined_call_operand.vmem [shape: f32[1,256], index: 10, kind: input, shape index: {}]   ;;  %s3480_s11 = inlined_call_operand.hbm [shape: bf16[256,128], index: 11, kind: input, shape index: {}]   ;;  %s3481_s12 = inlined_call_operand.hbm [shape: f32[1,128], index: 12, kind: input, shape index: {}]   ;;  %s3482_s13 = inlined_call_operand.hbm [shape: bf16[2,128], index: 13, kind: output, shape index: {}]  }
   0x1   :  { %19 = vsyncpa [#allocation6], 0 }
   0x2   :  { %20 = vsyncpa [#allocation9], 0 }
   0x3   :  { %21 = vsyncpa [#allocation12], 0 }
   0x4   :  { %22 = vsyncpa [#allocation4], 0 }
   0x5   :  { %29 = vsyncadd [#allocation3], 96  ;;  %s2811_s25 = smov [#allocation5]   ;;  %s2812_s27 = smov [#allocation8]  }
   0x6   :  { %s45_s26 = sshll.u32 %s2811_s25, 4  ;;  %s65_s28 = sshll.u32 %s2812_s27, 4  ;;  %s46_s26 = int_to_ptr.vmem [resolvable:$true] %s45_s26  ;;  %s66_s28 = int_to_ptr.vmem [resolvable:$true] %s65_s28 }
   0x7   :  { %s2649_s29 = scalar_lea.vmem %s46_s26, 16  ;;  %s2653_s30 = scalar_lea.vmem %s46_s26, 32 }
   0x8   :  { %p2650_p0 = scmp.ne.s32.totalorder %s46_s26, %s2649_s29  ;;  %p2654_p1 = scmp.lt.s32.totalorder %s46_s26, %s46_s26 }
   0x9   :  { %p2655_p2 = scmp.lt.s32.totalorder %s2653_s30, %s2649_s29 }
   0xb   :  { %p2656_p3 = por %p2655_p2, %p2654_p1 }
   0xd   :  { %p2657_p4 = pnand %p2656_p3, %p2650_p0 }
   0xf   :  { %2660 = shalt.err (!%p2657_p4)
}
  0x10   :  { %48 = dma.hbm_to_vmem [thread:$0]  %s3472_s3, 16, %s46_s26, [#allocation6]  }
  0x11   :  { %s2669_s16 = scalar_lea.vmem %s66_s28, 16  ;;  %s2673_s17 = scalar_lea.vmem %s66_s28, 32 }
  0x12   :  { %p2670_p5 = scmp.ne.s32.totalorder %s66_s28, %s2669_s16  ;;  %p2674_p6 = scmp.lt.s32.totalorder %s66_s28, %s66_s28 }
  0x13   :  { %p2675_p7 = scmp.lt.s32.totalorder %s2673_s17, %s2669_s16 }
  0x15   :  { %p2676_p8 = por %p2675_p7, %p2674_p6 }
  0x17   :  { %p2677_p9 = pnand %p2676_p8, %p2670_p5 }
  0x19   :  { %2680 = shalt.err (!%p2677_p9)
}
  0x1a   :  { %68 = dma.hbm_to_vmem [thread:$0]  %s3474_s5, 16, %s66_s28, [#allocation9]  }
  0x1b   :  { %s2813_s20 = smov [#allocation11]  }
  0x1c   :  { %s92_s21 = sshll.u32 %s2813_s20, 4  ;;  %s93_s21 = int_to_ptr.vmem [resolvable:$true] %s92_s21 }
  0x1d   :  { %s2689_s22 = scalar_lea.vmem %s93_s21, 2048  ;;  %p2694_p11 = scmp.lt.s32.totalorder %s93_s21, %s93_s21 }
  0x1e   :  { %p2690_p10 = scmp.ne.s32.totalorder %s93_s21, %s2689_s22  ;;  %p2695_p12 = scmp.lt.s32.totalorder %s2689_s22, %s2689_s22 }
  0x20   :  { %p2696_p13 = por %p2695_p12, %p2694_p11 }
  0x22   :  { %p2697_p0 = pnand %p2696_p13, %p2690_p10 }
  0x24   :  { %2700 = shalt.err (!%p2697_p0)
}
  0x25   :  { %s2814_s3 = smov 64   ;;  %s2815_s23 = smov 4  }
  0x26   :  { %98 = dma.hbm_to_vmem [thread:$0]  %s3480_s11, 2048, %s93_s21, [#allocation12], %s2814_s3, %s2814_s3, %s2815_s23  }
  0x27   :  { %s2816_s26 = smov [#allocation2]  }
  0x28   :  { %s30_s27 = sshll.u32 %s2816_s26, 4  ;;  %s31_s27 = int_to_ptr.vmem [resolvable:$true] %s30_s27 }
  0x29   :  { %s2709_s5 = scalar_lea.vmem %s31_s27, 32  ;;  %s2713_s28 = scalar_lea.vmem %s31_s27, 128 }
  0x2a   :  { %p2710_p1 = scmp.ne.s32.totalorder %s31_s27, %s2709_s5  ;;  %p2714_p2 = scmp.lt.s32.totalorder %s31_s27, %s31_s27 }
  0x2b   :  { %p2715_p3 = scmp.lt.s32.totalorder %s2713_s28, %s2709_s5 }
  0x2d   :  { %p2716_p4 = por %p2715_p3, %p2714_p2 }
  0x2f   :  { %p2717_p5 = pnand %p2716_p4, %p2710_p1 }
  0x31   :  { %2720 = shalt.err (!%p2717_p5)
}
  0x32   :  { %s2817_s29 = smov 32   ;;  %s2818_s30 = smov 2  }
  0x33   :  { %36 = dma.hbm_to_vmem [thread:$0]  %s3470_s1, 32, %s31_s27, [#allocation3], %s2817_s29, %s2817_s29, %s2818_s30  }
  0x34   :  { %s2819_s16 = smov [#allocation7]   ;;  %s2820_s11 = smov [#allocation10]  }
  0x35   :  { %s55_s17 = sshll.u32 %s2819_s16, 4  ;;  %s79_s18 = sshll.u32 %s2820_s11, 4  ;;  %s56_s17 = int_to_ptr.vmem [resolvable:$true] %s55_s17  ;;  %s80_s18 = int_to_ptr.vmem [resolvable:$true] %s79_s18 }
  0x36   :  { %s2729_s19 = scalar_lea.vmem %s56_s17, 64  ;;  %p2734_p7 = scmp.lt.s32.totalorder %s56_s17, %s56_s17 }
  0x37   :  { %p2730_p6 = scmp.ne.s32.totalorder %s56_s17, %s2729_s19  ;;  %p2735_p8 = scmp.lt.s32.totalorder %s2729_s19, %s2729_s19 }
  0x39   :  { %p2736_p9 = por %p2735_p8, %p2734_p7 }
  0x3b   :  { %p2737_p10 = pnand %p2736_p9, %p2730_p6 }
  0x3d   :  { %2740 = shalt.err (!%p2737_p10)
}
  0x3e   :  { %58 = dma.hbm_to_vmem [thread:$0]  %s3473_s4, 64, %s56_s17, [#allocation6]  }
  0x3f   :  { %s2749_s22 = scalar_lea.vmem %s80_s18, 64  ;;  %p2754_p12 = scmp.lt.s32.totalorder %s80_s18, %s80_s18 }
  0x40   :  { %p2750_p11 = scmp.ne.s32.totalorder %s80_s18, %s2749_s22  ;;  %p2755_p13 = scmp.lt.s32.totalorder %s2749_s22, %s2749_s22 }
  0x42   :  { %p2756_p0 = por %p2755_p13, %p2754_p12 }
  0x44   :  { %p2757_p1 = pnand %p2756_p0, %p2750_p11 }
  0x46   :  { %2760 = shalt.err (!%p2757_p1)
}
  0x47   :  { %82 = dma.hbm_to_vmem [thread:$0]  %s3477_s8, 64, %s80_s18, [#allocation9]  }
  0x48   :  { %s2821_s23 = smov [#allocation13]  }
  0x49   :  { %s105_s24 = sshll.u32 %s2821_s23, 4  ;;  %s106_s24 = int_to_ptr.vmem [resolvable:$true] %s105_s24 }
  0x4a   :  { %s2769_s25 = scalar_lea.vmem %s106_s24, 16  ;;  %s2773_s26 = scalar_lea.vmem %s106_s24, 32 }
  0x4b   :  { %p2770_p2 = scmp.ne.s32.totalorder %s106_s24, %s2769_s25  ;;  %p2774_p3 = scmp.lt.s32.totalorder %s106_s24, %s106_s24 }
  0x4c   :  { %p2775_p4 = scmp.lt.s32.totalorder %s2773_s26, %s2769_s25 }
  0x4e   :  { %p2776_p5 = por %p2775_p4, %p2774_p3 }
  0x50   :  { %p2777_p6 = pnand %p2776_p5, %p2770_p2 }
  0x52   :  { %2780 = shalt.err (!%p2777_p6)
}
  0x53   :  { %108 = dma.hbm_to_vmem [thread:$0]  %s3481_s12, 16, %s106_s24, [#allocation12]  }
  0x54   :  { %2801 = dma.done.wait [#allocation3], 128  }
  0x55   :  { %2802 = vsyncadd [#allocation3], 4294967168 }
  0x56   :  { %2803 = dma.done.wait [#allocation6], 80  }
  0x57   :  { %2804 = vsyncadd [#allocation6], 4294967216 }
  0x58   :  { %2805 = dma.done.wait [#allocation9], 80  }
  0x59   :  { %2806 = vsyncadd [#allocation9], 4294967216 }
  0x5a   :  { %2807 = dma.done.wait [#allocation12], 2064  }
  0x5b   :  { %2808 = vsyncadd [#allocation12], 4294965232  ;;  %v2405_v0 = vld [vmem:[%s3471_s2 + $0x78] sm:$0xff]   ;;  %v2409_v4 = vld [vmem:[%s3471_s2 + $0x70] sm:$0xff]   ;;  %v2822_v23 = vmov 1983009808   ;;  %v154_v25 = vlaneseq }
  0x5c   :  { %v2406_v1 = vld [vmem:[%s3471_s2 + $0x38] sm:$0xff]   ;;  %2268 = vmatprep.subr.bf16.mxu0 %v2405_v0  ;;  %v2410_v5 = vld [vmem:[%s3471_s2 + $0x30] sm:$0xff]   ;;  %v2413_v8 = vld [vmem:[%s3471_s2 + $0x68] sm:$0xff]   ;;  %v152_v24 = vunpack.c.l.s4 %v2822_v23  ;;  %vm928_vm0 = vcmask 1043456   ;;  %vm2824_vm1 = vmmov 0   ;;  %vm924_vm2 = vcmask 64512  }
  0x5d   :  { %v2407_v2 = vld [vmem:[%s3471_s2 + $0xf8] sm:$0xff]   ;;  %2269 = vmatpush3.bf16.msra.mxu0 %v2406_v1  ;;  %v2411_v6 = vld [vmem:[%s3471_s2 + $0xf0] sm:$0xff]   ;;  %v2414_v9 = vld [vmem:[%s3471_s2 + $0x28] sm:$0xff]   ;;  %v3002_v31 = vshrl.u32 %v154_v25, 7  ;;  %vm1086_vm3 = vcmask 523264  }
  0x5e   :  { %v2408_v3 = vld [vmem:[%s3471_s2 + $0xb8] sm:$0xff]   ;;  %2290 = vmatprep.subr.bf16.mxu1 %v2407_v2  ;;  %2270 = vmatprep.subr.bf16.mxu0 %v2409_v4  ;;  %v2412_v7 = vld [vmem:[%s3471_s2 + $0xb0] sm:$0xff]   ;;  %v2415_v10 = vld [vmem:[%s3471_s2 + $0xe8] sm:$0xff]   ;;  %v153_v30 = vunpack.c.0.s8 %v152_v24 }
  0x5f   :  { %2291 = vmatpush3.bf16.msra.mxu1 %v2408_v3  ;;  %v2416_v11 = vld [vmem:[%s3471_s2 + $0xa8] sm:$0xff]   ;;  %v2417_v12 = vld [vmem:[%s3471_s2 + $0x60] sm:$0xff]   ;;  %v2421_v16 = vld [vmem:[%s3471_s2 + $0x58] sm:$0xff]  }
  0x60   :  { %2292 = vmatprep.subr.bf16.mxu1 %v2411_v6  ;;  %v2418_v13 = vld [vmem:[%s3471_s2 + $0x20] sm:$0xff]   ;;  %v2422_v17 = vld [vmem:[%s3471_s2 + $0x18] sm:$0xff]   ;;  %v2425_v20 = vld [vmem:[%s3471_s2 + $0x50] sm:$0xff]   ;;  %v3017_v36 = vsub.s32 %v153_v30, %v3002_v31 }
  0x61   :  { %2271 = vmatpush3.bf16.msra.mxu0 %v2410_v5  ;;  %v2419_v14 = vld [vmem:[%s3471_s2 + $0xe0] sm:$0xff]   ;;  %v2423_v18 = vld [vmem:[%s3471_s2 + $0xd8] sm:$0xff]   ;;  %v2426_v21 = vld [vmem:[%s3471_s2 + $0x10] sm:$0xff]  }
  0x62   :  { %2272 = vmatprep.subr.bf16.mxu0 %v2413_v8  ;;  %v2420_v15 = vld [vmem:[%s3471_s2 + $0xa0] sm:$0xff]   ;;  %v2424_v19 = vld [vmem:[%s3471_s2 + $0x98] sm:$0xff]   ;;  %v2427_v22 = vld [vmem:[%s3471_s2 + $0xd0] sm:$0xff]  }
  0x63   :  { %2293 = vmatpush3.bf16.msra.mxu1 %v2412_v7  ;;  %v2428_v26 = vld [vmem:[%s3471_s2 + $0x90] sm:$0xff]   ;;  %v2429_v27 = vld [vmem:[%s3471_s2 + $0x48] sm:$0xff]   ;;  %v2433_v33 = vld [vmem:[%s3471_s2 + $0x40] sm:$0xff]  }
  0x64   :  { %2294 = vmatprep.subr.bf16.mxu1 %v2415_v10  ;;  %v2430_v28 = vld [vmem:[%s3471_s2 + $0x8] sm:$0xff]   ;;  %v2434_v34 = vld [vmem:[%s3471_s2] sm:$0xff]   ;;  %v2441_v42 = vld [vmem:[%s3471_s2 + $0x178] sm:$0xff]  }
  0x65   :  { %2273 = vmatpush3.bf16.msra.mxu0 %v2414_v9  ;;  %v2431_v29 = vld [vmem:[%s3471_s2 + $0xc8] sm:$0xff]   ;;  %v2435_v35 = vld [vmem:[%s3471_s2 + $0xc0] sm:$0xff]   ;;  %v2445_v49 = vld [vmem:[%s3471_s2 + $0x1f8] sm:$0xff]  }
  0x66   :  { %2274 = vmatprep.subr.bf16.mxu0 %v2417_v12  ;;  %v2432_v32 = vld [vmem:[%s3471_s2 + $0x88] sm:$0xff]   ;;  %v2436_v37 = vld [vmem:[%s3469_s0] ss:$16 sps:$4 sm:$0xff]   ;;  %v2442_v43 = vld [vmem:[%s3469_s0 + $0x4] ss:$16 sps:$4 sm:$0xff]  }
  0x67   :  { %2295 = vmatpush3.bf16.msra.mxu1 %v2416_v11  ;;  %v2438_v38 = vld [vmem:[%s3469_s0 + $0x20] ss:$16 sps:$4 sm:$0xff]   ;;  %v157_v40 = vrot.slane %v2436_v37, %v3017_v36  ;;  %v2443_v44 = vld [vmem:[%s3469_s0 + $0x24] ss:$16 sps:$4 sm:$0xff]   ;;  %v164_v47 = vrot.slane %v2442_v43, %v3017_v36  ;;  %v2444_v52 = vld [vmem:[%s3471_s2 + $0x138] sm:$0xff]  }
  0x68   :  { %2296 = vmatprep.subr.bf16.mxu1 %v2419_v14  ;;  %v2440_v39 = vld [vmem:[%s3471_s2 + $0x80] sm:$0xff]   ;;  %v171_v41 = vrot.slane %v2438_v38, %v3017_v36  ;;  %v178_v48 = vrot.slane %v2443_v44, %v3017_v36  ;;  %v2447_v55 = vld [vmem:[%s3471_s2 + $0x170] sm:$0xff]   ;;  %v2446_v56 = vld [vmem:[%s3471_s2 + $0x1b8] sm:$0xff]  }
  0x69   :  { %2275 = vmatpush3.bf16.msra.mxu0 %v2418_v13  ;;  %v2448_v59 = vld [vmem:[%s3471_s2 + $0x130] sm:$0xff]   ;;  %v2451_v61 = vld [vmem:[%s3471_s2 + $0x168] sm:$0xff]   ;;  %v2455_v1 = vld [vmem:[%s3471_s2 + $0x160] sm:$0xff]  }
  0x6a   :  { %2276 = vmatprep.subr.bf16.mxu0 %v2421_v16  ;;  %v180_v45 = vcombine.high %v157_v40, %v171_v41  ;;  %v179_v46 = vcombine.low %v157_v40, %v171_v41  ;;  %v182_v53 = vcombine.high %v164_v47, %v178_v48  ;;  %v181_v54 = vcombine.low %v164_v47, %v178_v48  ;;  %v2449_v60 = vld [vmem:[%s3471_s2 + $0x1f0] sm:$0xff]   ;;  %v2452_v63 = vld [vmem:[%s3471_s2 + $0x128] sm:$0xff]   ;;  %v2456_v3 = vld [vmem:[%s3471_s2 + $0x120] sm:$0xff]  }
  0x6b   :  { %2297 = vmatpush3.bf16.msra.mxu1 %v2420_v15  ;;  %v2450_v62 = vld [vmem:[%s3471_s2 + $0x1b0] sm:$0xff]   ;;  %v2453_v0 = vld [vmem:[%s3471_s2 + $0x1e8] sm:$0xff]   ;;  %v2457_v4 = vld [vmem:[%s3471_s2 + $0x1e0] sm:$0xff]  }
  0x6c   :  { %2298 = vmatprep.subr.bf16.mxu1 %v2423_v18  ;;  %v228_v50 = vpack.c.bf16 %v180_v45, %v180_v45  ;;  %v227_v51 = vpack.c.bf16 %v179_v46, %v179_v46  ;;  %v230_v57 = vpack.c.bf16 %v182_v53, %v182_v53  ;;  %v229_v58 = vpack.c.bf16 %v181_v54, %v181_v54  ;;  %v2454_v2 = vld [vmem:[%s3471_s2 + $0x1a8] sm:$0xff]   ;;  %v2459_v5 = vld [vmem:[%s3471_s2 + $0x158] sm:$0xff]   ;;  %v2458_v6 = vld [vmem:[%s3471_s2 + $0x1a0] sm:$0xff]  }
  0x6d   :  { %2277 = vmatpush3.bf16.msra.mxu0 %v2422_v17  ;;  %v2460_v7 = vld [vmem:[%s3471_s2 + $0x118] sm:$0xff]   ;;  %v2463_v9 = vld [vmem:[%s3471_s2 + $0x150] sm:$0xff]   ;;  %v2467_v13 = vld [vmem:[%s3471_s2 + $0x148] sm:$0xff]  }
  0x6e   :  { %2278 = vmatprep.subr.bf16.mxu0 %v2425_v20  ;;  %788 = vmatprep.mubr.bf16.mxu0 %v228_v50  ;;  %v2461_v8 = vld [vmem:[%s3471_s2 + $0x1d8] sm:$0xff]   ;;  %v2464_v11 = vld [vmem:[%s3471_s2 + $0x110] sm:$0xff]   ;;  %v2468_v15 = vld [vmem:[%s3471_s2 + $0x108] sm:$0xff]  }
  0x6f   :  { %2299 = vmatpush3.bf16.msra.mxu1 %v2424_v19  ;;  %828 = vmatprep.mubr.bf16.mxu1 %v230_v57  ;;  %v2462_v10 = vld [vmem:[%s3471_s2 + $0x198] sm:$0xff]   ;;  %v2465_v12 = vld [vmem:[%s3471_s2 + $0x1d0] sm:$0xff]   ;;  %v2469_v16 = vld [vmem:[%s3471_s2 + $0x1c8] sm:$0xff]  }
  0x70   :  { %2300 = vmatprep.subr.bf16.mxu1 %v2427_v22  ;;  %v2466_v14 = vld [vmem:[%s3471_s2 + $0x190] sm:$0xff]   ;;  %v2470_v17 = vld [vmem:[%s3471_s2 + $0x188] sm:$0xff]   ;;  %v2471_v18 = vld [vmem:[%s3471_s2 + $0x140] sm:$0xff]  }
  0x71   :  { %2279 = vmatpush3.bf16.msra.mxu0 %v2426_v21  ;;  %v2472_v19 = vld [vmem:[%s3471_s2 + $0x100] sm:$0xff]   ;;  %v2474_v21 = vld [vmem:[%s3469_s0 + $0x8] ss:$16 sps:$4 sm:$0xff]   ;;  %v2479_v23 = vld [vmem:[%s3469_s0 + $0xc] ss:$16 sps:$4 sm:$0xff]  }
  0x72   :  { %2280 = vmatprep.subr.bf16.mxu0 %v2429_v27  ;;  %v2473_v20 = vld [vmem:[%s3471_s2 + $0x1c0] sm:$0xff]   ;;  %v2476_v22 = vld [vmem:[%s3469_s0 + $0x28] ss:$16 sps:$4 sm:$0xff]   ;;  %v193_v24 = vrot.slane %v2474_v21, %v3017_v36  ;;  %v2480_v27 = vld [vmem:[%s3469_s0 + $0x2c] ss:$16 sps:$4 sm:$0xff]  }
  0x73   :  { %2301 = vmatpush3.bf16.msra.mxu1 %v2428_v26  ;;  %v207_v25 = vrot.slane %v2476_v22, %v3017_v36  ;;  %v2478_v26 = vld [vmem:[%s3471_s2 + $0x180] sm:$0xff]   ;;  %v2147_v21 = vld [vmem:[#allocation8] ss:$0 sm:$0xff] }
  0x74   :  { %2302 = vmatprep.subr.bf16.mxu1 %v2431_v29  ;;  %v200_v29 = vrot.slane %v2479_v23, %v3017_v36  ;;  %v235_v43 = vld [vmem:[#allocation2] sm:$0xff] }
  0x75   :  { %2281 = vmatpush3.bf16.msra.mxu0 %v2430_v28  ;;  %v916_v28 = vld [vmem:[#allocation7] sm:$0xf]  ;;  %v216_v30 = vcombine.high %v193_v24, %v207_v25  ;;  %v236_v44 = vpack.c.bf16 %v235_v43, %v235_v43  ;;  %v2483_v45 = vld [vmem:[%s3475_s6 + $0x64] ss:$16 sps:$4 sm:$0xff]   ;;  %v2484_v46 = vld [vmem:[%s3476_s7 + $0x60] ss:$16 sps:$4 sm:$0xff]  }
  0x76   :  { %2282 = vmatprep.subr.bf16.mxu0 %v2433_v33  ;;  %v2823_v33 = vmov 0.0   ;;  %v930_v40 = vsel %vm928_vm0, %v916_v28, 0  ;;  %v2486_v47 = vld [vmem:[%s3476_s7 + $0x64] ss:$16 sps:$4 sm:$0xff]   ;;  %v2493_v53 = vld [vmem:[%s3475_s6 + $0x20] ss:$16 sps:$4 sm:$0xff]  }
  0x77   :  { %2303 = vmatpush3.bf16.msra.mxu1 %v2432_v32  ;;  %v215_v32 = vcombine.low %v193_v24, %v207_v25  ;;  %v2489_v48 = vld [vmem:[%s3475_s6 + $0x44] ss:$16 sps:$4 sm:$0xff]   ;;  %v2499_v57 = vld [vmem:[%s3475_s6] ss:$16 sps:$4 sm:$0xff]  }
  0x78   :  { %2304 = vmatprep.subr.bf16.mxu1 %v2435_v35  ;;  %v232_v35 = vpack.c.bf16 %v216_v30, %v216_v30  ;;  %v2492_v50 = vld [vmem:[%s3476_s7 + $0x44] ss:$16 sps:$4 sm:$0xff]  }
  0x79   :  { %2283 = vmatpush3.bf16.msra.mxu0 %v2434_v34  ;;  %v214_v34 = vrot.slane %v2480_v27, %v3017_v36  ;;  %v231_v37 = vpack.c.bf16 %v215_v32, %v215_v32  ;;  %v2481_v36 = vld [vmem:[%s3475_s6 + $0x60] ss:$16 sps:$4 sm:$0xff]   ;;  %v2498_v54 = vld [vmem:[%s3476_s7 + $0x24] ss:$16 sps:$4 sm:$0xff]   ;;  %v2505_v32 = vld [vmem:[%s3476_s7 + $0x68] ss:$16 sps:$4 sm:$0xff]  }
  0x7a   :  { %2312 = vmatprep.subr.bf16.mxu0 %v2441_v42  ;;  %v2540_v43 = vld [vmem:[%s3478_s9 + $0x44] ss:$8 sps:$4 sm:$0xff]  }
  0x7b   :  { %2305 = vmatpush3.bf16.msra.mxu1 %v2440_v39  ;;  %v218_v38 = vcombine.high %v200_v29, %v214_v34  ;;  %v217_v39 = vcombine.low %v200_v29, %v214_v34  ;;  %v2534_v29 = vld [vmem:[%s3478_s9 + $0x64] ss:$8 sps:$4 sm:$0xff]  }
  0x7c   :  { %2334 = vmatprep.subr.bf16.mxu1 %v2445_v49  ;;  %789 = vmatmul.mubr.bf16.vlgmr.msra.gmra.mxu0 %v227_v51  ;;  %v2487_v49 = vld [vmem:[%s3475_s6 + $0x40] ss:$16 sps:$4 sm:$0xff]   ;;  %v2510_v34 = vld [vmem:[%s3476_s7 + $0x4c] ss:$16 sps:$4 sm:$0xff]  }
  0x7d   :  { %2313 = vmatpush3.bf16.msra.mxu0 %v2444_v52  ;;  %868 = vmatprep.mubr.bf16.mxu0 %v232_v35  ;;  %v234_v41 = vpack.c.bf16 %v218_v38, %v218_v38  ;;  %v233_v42 = vpack.c.bf16 %v217_v39, %v217_v39  ;;  %v2490_v51 = vld [vmem:[%s3476_s7 + $0x40] ss:$16 sps:$4 sm:$0xff]   ;;  %v2495_v52 = vld [vmem:[%s3475_s6 + $0x24] ss:$16 sps:$4 sm:$0xff]  }
  0x7e   :  { %2314 = vmatprep.subr.bf16.mxu0 %v2447_v55  ;;  %829 = vmatmul.mubr.bf16.vlgmr.msra.gmra.mxu1 %v229_v58  ;;  %v2496_v55 = vld [vmem:[%s3476_s7 + $0x20] ss:$16 sps:$4 sm:$0xff]   ;;  %v2504_v58 = vld [vmem:[%s3476_s7 + $0x4] ss:$16 sps:$4 sm:$0xff]  }
  0x7f   :  { %2335 = vmatpush3.bf16.msra.mxu1 %v2446_v56  ;;  %908 = vmatprep.mubr.bf16.mxu1 %v234_v41  ;;  %v2501_v56 = vld [vmem:[%s3475_s6 + $0x4] ss:$16 sps:$4 sm:$0xff]   ;;  %v2513_v41 = vld [vmem:[%s3476_s7 + $0x2c] ss:$16 sps:$4 sm:$0xff]  }
  0x80   :  { %2336 = vmatprep.subr.bf16.mxu1 %v2449_v60  ;;  %v2825_v60 = vmov 0   ;;  %v2537_v38 = vld [vmem:[%s3478_s9 + $0x54] ss:$8 sps:$4 sm:$0xff]  }
  0x81   :  { %2315 = vmatpush3.bf16.msra.mxu0 %v2448_v59  ;;  %v2502_v59 = vld [vmem:[%s3476_s7] ss:$16 sps:$4 sm:$0xff]  }
  0x82   :  { %2316 = vmatprep.subr.bf16.mxu0 %v2451_v61  ;;  %v2507_v61 = vld [vmem:[%s3476_s7 + $0x6c] ss:$16 sps:$4 sm:$0xff]  }
  0x83   :  { %2337 = vmatpush3.bf16.msra.mxu1 %v2450_v62  ;;  %v2531_v62 = vld [vmem:[%s3478_s9 + $0x74] ss:$8 sps:$4 sm:$0xff]  }
  0x84   :  { %2338 = vmatprep.subr.bf16.mxu1 %v2453_v0 }
  0x85   :  { %2317 = vmatpush3.bf16.msra.mxu0 %v2452_v63 }
  0x86   :  { %2318 = vmatprep.subr.bf16.mxu0 %v2455_v1 }
  0x87   :  { %2339 = vmatpush3.bf16.msra.mxu1 %v2454_v2 }
  0x88   :  { %2340 = vmatprep.subr.bf16.mxu1 %v2457_v4 }
  0x89   :  { %2319 = vmatpush3.bf16.msra.mxu0 %v2456_v3 }
  0x8a   :  { %2320 = vmatprep.subr.bf16.mxu0 %v2459_v5 }
  0x8b   :  { %2341 = vmatpush3.bf16.msra.mxu1 %v2458_v6 }
  0x8c   :  { %2342 = vmatprep.subr.bf16.mxu1 %v2461_v8  ;;  %v2082_v8 = vld [vmem:[#allocation5] ss:$0 sm:$0xff] }
  0x8d   :  { %2321 = vmatpush3.bf16.msra.mxu0 %v2460_v7 }
  0x8e   :  { %2322 = vmatprep.subr.bf16.mxu0 %v2463_v9 }
  0x8f   :  { %2343 = vmatpush3.bf16.msra.mxu1 %v2462_v10 }
  0x90   :  { %2344 = vmatprep.subr.bf16.mxu1 %v2465_v12 }
  0x91   :  { %2323 = vmatpush3.bf16.msra.mxu0 %v2464_v11 }
  0x92   :  { %2324 = vmatprep.subr.bf16.mxu0 %v2467_v13 }
  0x93   :  { %2345 = vmatpush3.bf16.msra.mxu1 %v2466_v14 }
  0x94   :  { %2346 = vmatprep.subr.bf16.mxu1 %v2469_v16 }
  0x95   :  { %2325 = vmatpush3.bf16.msra.mxu0 %v2468_v15 }
  0x96   :  { %2326 = vmatprep.subr.bf16.mxu0 %v2471_v18 }
  0x97   :  { %2347 = vmatpush3.bf16.msra.mxu1 %v2470_v17 }
  0x98   :  { %2348 = vmatprep.subr.bf16.mxu1 %v2473_v20 }
  0x99   :  { %2327 = vmatpush3.bf16.msra.mxu0 %v2472_v19 }
  0x9a   :  { %2380 = vmatprep.subr.bf16.mxu0 %v2823_v33 }
  0x9b   :  { %2349 = vmatpush3.bf16.msra.mxu1 %v2478_v26  ;;  %v2529_v26 = vld [vmem:[%s3478_s9 + $0x70] ss:$8 sps:$4 sm:$0xff]  }
  0x9c   :  { %869 = vmatmul.mubr.bf16.vlgmr.msra.gmra.mxu0 %v231_v37  ;;  %1263 = vmatprep.subr.bf16.mxu1 %v2483_v45  ;;  %v2532_v37 = vld [vmem:[%s3478_s9 + $0x60] ss:$8 sps:$4 sm:$0xff]  }
  0x9d   :  { %2381 = vmatpush3.bf16.msra.mxu0 %v930_v40  ;;  %2382 = vmatprep.mubr.msk.bf16.mxu0 %vm2824_vm1, %v2823_v33  ;;  %v2508_v40 = vld [vmem:[%s3476_s7 + $0x48] ss:$16 sps:$4 sm:$0xff]  }
  0x9e   :  { %909 = vmatmul.mubr.bf16.vlgmr.msra.gmra.mxu1 %v233_v42  ;;  %1098 = vmatprep.subr.bf16.mxu0 %v2486_v47  ;;  %v2535_v42 = vld [vmem:[%s3478_s9 + $0x50] ss:$8 sps:$4 sm:$0xff]   ;;  %v2538_v45 = vld [vmem:[%s3478_s9 + $0x40] ss:$8 sps:$4 sm:$0xff]  }
  0x9f   :  { %1264 = vmatpush1.bf16.msra.mxu1 %v2481_v36  ;;  %1287 = vmatprep.mubr.bf16.mxu1 %v2825_v60  ;;  %v2516_v36 = vld [vmem:[%s3476_s7 + $0xc] ss:$16 sps:$4 sm:$0xff]   ;;  %v2514_v47 = vld [vmem:[%s3476_s7 + $0x8] ss:$16 sps:$4 sm:$0xff]  }
  0xa0   :  { %1265 = vmatprep.subr.bf16.mxu1 %v2489_v48  ;;  %v2519_v48 = vld [vmem:[%s3475_s6 + $0x6c] ss:$16 sps:$4 sm:$0xff]  }
  0xa3   :  { %1266 = vmatpush1.bf16.msra.mxu1 %v2487_v49  ;;  %v2541_v49 = vld [vmem:[%s3478_s9 + $0x30] ss:$8 sps:$4 sm:$0xff]  }
  0xa4   :  { %2383 = vmatmul.mubr.msk.bf16.vlgmr.msra.gmra.mxu0 %vm924_vm2, %v236_v44  ;;  %1267 = vmatprep.subr.bf16.mxu1 %v2495_v52  ;;  %v2511_v44 = vld [vmem:[%s3476_s7 + $0x28] ss:$16 sps:$4 sm:$0xff]   ;;  %v2522_v52 = vld [vmem:[%s3475_s6 + $0x4c] ss:$16 sps:$4 sm:$0xff]  }
  0xa5   :  { %1099 = vmatpush1.bf16.msra.mxu0 %v2484_v46  ;;  %1122 = vmatprep.mubr.bf16.mxu0 %v2825_v60  ;;  %v2543_v46 = vld [vmem:[%s3478_s9 + $0x34] ss:$8 sps:$4 sm:$0xff]  }
  0xa6   :  { %1100 = vmatprep.subr.bf16.mxu0 %v2492_v50  ;;  %v2546_v50 = vld [vmem:[%s3478_s9 + $0x24] ss:$8 sps:$4 sm:$0xff]  }
  0xa7   :  { %1268 = vmatpush1.bf16.msra.mxu1 %v2493_v53  ;;  %v2544_v53 = vld [vmem:[%s3478_s9 + $0x20] ss:$8 sps:$4 sm:$0xff]  }
  0xa8   :  { %1269 = vmatprep.subr.bf16.mxu1 %v2501_v56  ;;  %v2525_v56 = vld [vmem:[%s3475_s6 + $0x2c] ss:$16 sps:$4 sm:$0xff]  }
  0xa9   :  { %1101 = vmatpush1.bf16.msra.mxu0 %v2490_v51  ;;  %v2517_v51 = vld [vmem:[%s3475_s6 + $0x68] ss:$16 sps:$4 sm:$0xff]  }
  0xaa   :  { %1102 = vmatprep.subr.bf16.mxu0 %v2498_v54  ;;  %v2549_v54 = vld [vmem:[%s3478_s9 + $0x14] ss:$8 sps:$4 sm:$0xff]  }
  0xab   :  { %1270 = vmatpush1.bf16.msra.mxu1 %v2499_v57  ;;  %v2547_v57 = vld [vmem:[%s3478_s9 + $0x10] ss:$8 sps:$4 sm:$0xff]  }
  0xac   :  { %1767 = vmatprep.subr.bf16.mxu1 %v2531_v62  ;;  %v2558_v62 = vld [vmem:[%s3478_s9 + $0xf4] ss:$8 sps:$4 sm:$0xff]  }
  0xad   :  { %1103 = vmatpush1.bf16.msra.mxu0 %v2496_v55  ;;  %v2520_v55 = vld [vmem:[%s3475_s6 + $0x48] ss:$16 sps:$4 sm:$0xff]  }
  0xae   :  { %1104 = vmatprep.subr.bf16.mxu0 %v2504_v58  ;;  %v2552_v58 = vld [vmem:[%s3478_s9 + $0x4] ss:$8 sps:$4 sm:$0xff]  }
  0xb1   :  { %1105 = vmatpush1.bf16.msra.mxu0 %v2502_v59  ;;  %v2523_v59 = vld [vmem:[%s3475_s6 + $0x28] ss:$16 sps:$4 sm:$0xff]  }
  0xb2   :  { %1139 = vmatprep.subr.bf16.mxu0 %v2507_v61  ;;  %v2550_v61 = vld [vmem:[%s3478_s9] ss:$8 sps:$4 sm:$0xff]  }
 0x13c   :  { %v2284_v63 = vpop.f32.mrf.mxu0 }
 0x13e   :  { %v2285_v0 = vpop.f32.mrf.mxu0  ;;  %v2306_v1 = vpop.f32.mrf.mxu1 }
 0x13f   :  { %v2286_v7 = vadd.f32 %v2285_v0, %v2284_v63  ;;  %v2526_v63 = vld [vmem:[%s3475_s6 + $0x8] ss:$16 sps:$4 sm:$0xff]   ;;  %v2555_v0 = vld [vmem:[%s3478_s9 + $0x174] ss:$8 sps:$4 sm:$0xff]  }
 0x140   :  { %v2287_v2 = vpop.f32.mrf.mxu0  ;;  %v2307_v3 = vpop.f32.mrf.mxu1 }
 0x141   :  { %v791_v9 = vadd.f32 %v2286_v7, %v2082_v8  ;;  %v2308_v10 = vadd.f32 %v2307_v3, %v2306_v1  ;;  %v2556_v1 = vld [vmem:[%s3478_s9 + $0xf0] ss:$8 sps:$4 sm:$0xff]   ;;  %v2564_v2 = vld [vmem:[%s3478_s9 + $0xe4] ss:$8 sps:$4 sm:$0xff]   ;;  %v2559_v7 = vld [vmem:[%s3478_s9 + $0x160] ss:$8 sps:$4 sm:$0xff]  }
 0x142   :  { %v2288_v4 = vpop.f32.mrf.mxu0  ;;  %v2309_v5 = vpop.f32.mrf.mxu1  ;;  %v2553_v3 = vld [vmem:[%s3478_s9 + $0x170] ss:$8 sps:$4 sm:$0xff]   ;;  %v2567_v8 = vld [vmem:[%s3478_s9 + $0x154] ss:$8 sps:$4 sm:$0xff]  }
 0x143   :  { %v831_v14 = vadd.f32 %v2308_v10, %v791_v9  ;;  %v2561_v4 = vld [vmem:[%s3478_s9 + $0x164] ss:$8 sps:$4 sm:$0xff]   ;;  %v2562_v5 = vld [vmem:[%s3478_s9 + $0xe0] ss:$8 sps:$4 sm:$0xff]   ;;  %v2568_v9 = vld [vmem:[%s3478_s9 + $0xd0] ss:$8 sps:$4 sm:$0xff]  }
 0x144   :  { %v2310_v6 = vpop.f32.mrf.mxu1  ;;  %v2576_v10 = vld [vmem:[%s3478_s9 + $0xc4] ss:$8 sps:$4 sm:$0xff]  }
 0x145   :  { %v2570_v6 = vld [vmem:[%s3478_s9 + $0xd4] ss:$8 sps:$4 sm:$0xff]  }
 0x15c   :  { %v2328_v11 = vpop.f32.mrf.mxu0 }
 0x15e   :  { %v2329_v12 = vpop.f32.mrf.mxu0  ;;  %v2350_v13 = vpop.f32.mrf.mxu1 }
 0x15f   :  { %v2330_v15 = vadd.f32 %v2329_v12, %v2328_v11  ;;  %v2565_v11 = vld [vmem:[%s3478_s9 + $0x150] ss:$8 sps:$4 sm:$0xff]   ;;  %v2573_v12 = vld [vmem:[%s3478_s9 + $0x144] ss:$8 sps:$4 sm:$0xff]  }
 0x160   :  { %v2331_v16 = vpop.f32.mrf.mxu0  ;;  %v2351_v17 = vpop.f32.mrf.mxu1 }
 0x161   :  { %v871_v18 = vadd.f32 %v2330_v15, %v831_v14  ;;  %v2352_v19 = vadd.f32 %v2351_v17, %v2350_v13  ;;  %v2574_v13 = vld [vmem:[%s3478_s9 + $0xc0] ss:$8 sps:$4 sm:$0xff]   ;;  %v2582_v14 = vld [vmem:[%s3478_s9 + $0xb4] ss:$8 sps:$4 sm:$0xff]   ;;  %v2580_v17 = vld [vmem:[%s3478_s9 + $0xb0] ss:$8 sps:$4 sm:$0xff]  }
 0x162   :  { %v2332_v20 = vpop.f32.mrf.mxu0  ;;  %v2353_v22 = vpop.f32.mrf.mxu1  ;;  %v2571_v15 = vld [vmem:[%s3478_s9 + $0x140] ss:$8 sps:$4 sm:$0xff]   ;;  %v2579_v16 = vld [vmem:[%s3478_s9 + $0x134] ss:$8 sps:$4 sm:$0xff]  }
 0x163   :  { %v911_v23 = vadd.f32 %v2352_v19, %v871_v18  ;;  %v2577_v18 = vld [vmem:[%s3478_s9 + $0x130] ss:$8 sps:$4 sm:$0xff]   ;;  %v2583_v19 = vld [vmem:[%s3478_s9 + $0x120] ss:$8 sps:$4 sm:$0xff]   ;;  %v2585_v20 = vld [vmem:[%s3478_s9 + $0x124] ss:$8 sps:$4 sm:$0xff]  }
 0x164   :  { %v966_v24 = vpop.f32.mrf.mxu0  ;;  %v2354_v25 = vpop.f32.mrf.mxu1  ;;  %v2586_v22 = vld [vmem:[%s3478_s9 + $0xa0] ss:$8 sps:$4 sm:$0xff]  }
 0x165   :  { %v3209_v27 = vpack.c.bf16 %v911_v23, %v911_v23  ;;  %v967_v28 = vadd.f32 %v2147_v21, %v966_v24  ;;  %v2588_v21 = vld [vmem:[%s3478_s9 + $0xa4] ss:$8 sps:$4 sm:$0xff]   ;;  %v2591_v23 = vld [vmem:[%s3478_s9 + $0x114] ss:$8 sps:$4 sm:$0xff]   ;;  %v2589_v24 = vld [vmem:[%s3478_s9 + $0x110] ss:$8 sps:$4 sm:$0xff]  }
 0x166   :  { %v2384_v30 = vpop.f32.mrf.mxu0  ;;  %v2594_v25 = vld [vmem:[%s3478_s9 + $0x94] ss:$8 sps:$4 sm:$0xff]  }
 0x167   :  { %v989_v33 = vpack.c.bf16 %v967_v28, %v967_v28  ;;  %2183 = vmatmul.mubr.msk.bf16.vlgmr.msra.gmra.mxu1 %vm1086_vm3, %v3209_v27  ;;  %v2595_v28 = vld [vmem:[%s3478_s9 + $0x100] ss:$8 sps:$4 sm:$0xff]  }
 0x168   :  { %v969_v35 = vpop.f32.mrf.mxu0  ;;  %1768 = vmatpush1.bf16.msra.mxu1 %v2529_v26  ;;  %v2592_v26 = vld [vmem:[%s3478_s9 + $0x90] ss:$8 sps:$4 sm:$0xff]   ;;  %v2598_v30 = vld [vmem:[%s3478_s9 + $0x80] ss:$8 sps:$4 sm:$0xff]  }
 0x169   :  { %2165 = vmatmul.mubr.msk.bf16.vlgmr.msra.gmra.mxu0 %vm1086_vm3, %v989_v33  ;;  %1769 = vmatprep.subr.bf16.mxu1 %v2534_v29  ;;  %v2600_v29 = vld [vmem:[%s3478_s9 + $0x84] ss:$8 sps:$4 sm:$0xff]   ;;  %v2604_v35 = vld [vmem:[%s3478_s9 + $0x1e0] ss:$8 sps:$4 sm:$0xff]  }
 0x16a   :  { %1140 = vmatpush1.bf16.msra.mxu0 %v2505_v32  ;;  %v2385_v39 = vpop.f32.mrf.mxu0  ;;  %1163 = vmatprep.mubr.bf16.mxu0 %v2825_v60  ;;  %v2603_v32 = vld [vmem:[%s3478_s9 + $0x1f4] ss:$8 sps:$4 sm:$0xff]  }
 0x16b   :  { %1141 = vmatprep.subr.bf16.mxu0 %v2510_v34  ;;  %v2606_v34 = vld [vmem:[%s3478_s9 + $0x1e4] ss:$8 sps:$4 sm:$0xff]   ;;  %v2610_v39 = vld [vmem:[%s3478_s9 + $0x1c0] ss:$8 sps:$4 sm:$0xff]  }
 0x16c   :  { %1770 = vmatpush1.bf16.msra.mxu1 %v2532_v37  ;;  %v2609_v37 = vld [vmem:[%s3478_s9 + $0x1d4] ss:$8 sps:$4 sm:$0xff]  }
 0x16d   :  { %1771 = vmatprep.subr.bf16.mxu1 %v2537_v38  ;;  %v2607_v38 = vld [vmem:[%s3478_s9 + $0x1d0] ss:$8 sps:$4 sm:$0xff]  }
 0x16e   :  { %1142 = vmatpush1.bf16.msra.mxu0 %v2508_v40  ;;  %v2612_v40 = vld [vmem:[%s3478_s9 + $0x1c4] ss:$8 sps:$4 sm:$0xff]  }
 0x16f   :  { %1143 = vmatprep.subr.bf16.mxu0 %v2513_v41  ;;  %v2615_v41 = vld [vmem:[%s3478_s9 + $0x1b4] ss:$8 sps:$4 sm:$0xff]  }
 0x170   :  { %1772 = vmatpush1.bf16.msra.mxu1 %v2535_v42  ;;  %v2613_v42 = vld [vmem:[%s3478_s9 + $0x1b0] ss:$8 sps:$4 sm:$0xff]  }
 0x171   :  { %1773 = vmatprep.subr.bf16.mxu1 %v2540_v43  ;;  %v2618_v43 = vld [vmem:[%s3478_s9 + $0x1a4] ss:$8 sps:$4 sm:$0xff]  }
 0x172   :  { %1144 = vmatpush1.bf16.msra.mxu0 %v2511_v44  ;;  %v2616_v44 = vld [vmem:[%s3478_s9 + $0x1a0] ss:$8 sps:$4 sm:$0xff]  }
 0x173   :  { %1145 = vmatprep.subr.bf16.mxu0 %v2516_v36  ;;  %v2621_v36 = vld [vmem:[%s3478_s9 + $0x194] ss:$8 sps:$4 sm:$0xff]  }
 0x174   :  { %1774 = vmatpush1.bf16.msra.mxu1 %v2538_v45  ;;  %v2619_v45 = vld [vmem:[%s3478_s9 + $0x190] ss:$8 sps:$4 sm:$0xff]  }
 0x175   :  { %1775 = vmatprep.subr.bf16.mxu1 %v2543_v46  ;;  %v2624_v46 = vld [vmem:[%s3478_s9 + $0x184] ss:$8 sps:$4 sm:$0xff]  }
 0x176   :  { %1146 = vmatpush1.bf16.msra.mxu0 %v2514_v47  ;;  %v2622_v47 = vld [vmem:[%s3478_s9 + $0x180] ss:$8 sps:$4 sm:$0xff]  }
 0x177   :  { %1304 = vmatprep.subr.bf16.mxu0 %v2519_v48  ;;  %v1341_v48 = vsub.s32 0, %v3002_v31 }
 0x178   :  { %1776 = vmatpush1.bf16.msra.mxu1 %v2541_v49  ;;  %v1337_v49 = vld [vmem:[#allocation10] sm:$0xf] }
 0x179   :  { %2166 = vmatmul.mubr.msk.bf16.vlgmr.msra.gmra.mxu0 %vm1086_vm3, %v989_v33  ;;  %1777 = vmatprep.subr.bf16.mxu1 %v2546_v50  ;;  %v2601_v33 = vld [vmem:[%s3478_s9 + $0x1f0] ss:$8 sps:$4 sm:$0xff]   ;;  %v1345_v50 = vsub.s32 1, %v3002_v31 }
 0x17a   :  { %1305 = vmatpush1.bf16.msra.mxu0 %v2517_v51  ;;  %1328 = vmatprep.mubr.bf16.mxu0 %v2825_v60  ;;  %v2528_v60 = vld [vmem:[%s3475_s6 + $0xc] ss:$16 sps:$4 sm:$0xff]  }
 0x17b   :  { %1306 = vmatprep.subr.bf16.mxu0 %v2522_v52  ;;  %v1342_v52 = vrot.slane %v1337_v49, %v1341_v48 }
 0x17c   :  { %1778 = vmatpush1.bf16.msra.mxu1 %v2544_v53 }
 0x17d   :  { %1779 = vmatprep.subr.bf16.mxu1 %v2549_v54 }
 0x17e   :  { %1307 = vmatpush1.bf16.msra.mxu0 %v2520_v55 }
 0x17f   :  { %1308 = vmatprep.subr.bf16.mxu0 %v2525_v56  ;;  %v1346_v56 = vrot.slane %v1337_v49, %v1345_v50 }
 0x180   :  { %1780 = vmatpush1.bf16.msra.mxu1 %v2547_v57 }
 0x181   :  { %1781 = vmatprep.subr.bf16.mxu1 %v2552_v58 }
 0x182   :  { %1309 = vmatpush1.bf16.msra.mxu0 %v2523_v59 }
 0x183   :  { %1310 = vmatprep.subr.bf16.mxu0 %v2528_v60 }
 0x184   :  { %1782 = vmatpush1.bf16.msra.mxu1 %v2550_v61 }
 0x185   :  { %1783 = vmatprep.subr.bf16.mxu1 %v2558_v62 }
 0x186   :  { %1311 = vmatpush1.bf16.msra.mxu0 %v2526_v63 }
 0x187   :  { %1808 = vmatprep.subr.bf16.mxu0 %v2555_v0 }
 0x188   :  { %1784 = vmatpush2.bf16.msra.mxu1 %v2556_v1 }
 0x189   :  { %2184 = vmatmul.mubr.msk.bf16.vlgmr.msra.gmra.mxu0 %vm1086_vm3, %v3209_v27  ;;  %1785 = vmatprep.subr.bf16.mxu1 %v2564_v2  ;;  %v2597_v27 = vld [vmem:[%s3478_s9 + $0x104] ss:$8 sps:$4 sm:$0xff]  }
 0x18a   :  { %1809 = vmatpush1.bf16.msra.mxu0 %v2553_v3 }
 0x18b   :  { %1810 = vmatprep.subr.bf16.mxu0 %v2561_v4 }
 0x18c   :  { %1786 = vmatpush2.bf16.msra.mxu1 %v2562_v5 }
 0x18d   :  { %1787 = vmatprep.subr.bf16.mxu1 %v2570_v6 }
 0x18e   :  { %1811 = vmatpush1.bf16.msra.mxu0 %v2559_v7 }
 0x18f   :  { %1812 = vmatprep.subr.bf16.mxu0 %v2567_v8 }
 0x190   :  { %1788 = vmatpush2.bf16.msra.mxu1 %v2568_v9  ;;  %v1349_v9 = vsub.s32 2, %v3002_v31 }
 0x191   :  { %1789 = vmatprep.subr.bf16.mxu1 %v2576_v10  ;;  %v1353_v10 = vsub.s32 3, %v3002_v31 }
 0x192   :  { %1813 = vmatpush1.bf16.msra.mxu0 %v2565_v11  ;;  %v1350_v11 = vrot.slane %v1337_v49, %v1349_v9 }
 0x193   :  { %1814 = vmatprep.subr.bf16.mxu0 %v2573_v12 }
 0x194   :  { %1790 = vmatpush2.bf16.msra.mxu1 %v2574_v13 }
 0x195   :  { %1791 = vmatprep.subr.bf16.mxu1 %v2582_v14  ;;  %v1354_v14 = vrot.slane %v1337_v49, %v1353_v10 }
 0x196   :  { %1815 = vmatpush1.bf16.msra.mxu0 %v2571_v15 }
 0x197   :  { %1816 = vmatprep.subr.bf16.mxu0 %v2579_v16 }
 0x198   :  { %1792 = vmatpush2.bf16.msra.mxu1 %v2580_v17 }
 0x199   :  { %1793 = vmatprep.subr.bf16.mxu1 %v2588_v21 }
 0x19a   :  { %1817 = vmatpush1.bf16.msra.mxu0 %v2577_v18 }
 0x19b   :  { %1818 = vmatprep.subr.bf16.mxu0 %v2585_v20 }
 0x19c   :  { %1794 = vmatpush2.bf16.msra.mxu1 %v2586_v22 }
 0x19d   :  { %1795 = vmatprep.subr.bf16.mxu1 %v2594_v25  ;;  %v2625_v25 = vld [vmem:[#allocation11 + $0x78] sm:$0xff]  }
 0x19e   :  { %1819 = vmatpush1.bf16.msra.mxu0 %v2583_v19 }
 0x19f   :  { %1820 = vmatprep.subr.bf16.mxu0 %v2591_v23 }
 0x1a0   :  { %1796 = vmatpush2.bf16.msra.mxu1 %v2592_v26  ;;  %v2626_v26 = vld [vmem:[#allocation11 + $0x38] sm:$0xff]  }
 0x1a1   :  { %1797 = vmatprep.subr.bf16.mxu1 %v2600_v29  ;;  %v2629_v29 = vld [vmem:[#allocation11 + $0x68] sm:$0xff]  }
 0x1a2   :  { %1821 = vmatpush1.bf16.msra.mxu0 %v2589_v24 }
 0x1a3   :  { %1822 = vmatprep.subr.bf16.mxu0 %v2597_v27  ;;  %v2627_v27 = vld [vmem:[#allocation11 + $0x70] sm:$0xff]  }
 0x1a4   :  { %1798 = vmatpush2.bf16.msra.mxu1 %v2598_v30  ;;  %v2630_v30 = vld [vmem:[#allocation11 + $0x28] sm:$0xff]  }
 0x1a5   :  { %2358 = vmatprep.subr.bf16.mxu1 %v2625_v25 }
 0x1a6   :  { %1823 = vmatpush1.bf16.msra.mxu0 %v2595_v28  ;;  %v2628_v28 = vld [vmem:[#allocation11 + $0x30] sm:$0xff]  }
 0x1a7   :  { %1824 = vmatprep.subr.bf16.mxu0 %v2603_v32  ;;  %v2631_v32 = vld [vmem:[#allocation11 + $0x60] sm:$0xff]  }
 0x1aa   :  { %1825 = vmatpush2.bf16.msra.mxu0 %v2601_v33  ;;  %v2632_v33 = vld [vmem:[#allocation11 + $0x20] sm:$0xff]  }
 0x1ab   :  { %1826 = vmatprep.subr.bf16.mxu0 %v2606_v34  ;;  %v2633_v34 = vld [vmem:[#allocation11 + $0x58] sm:$0xff]  }
 0x1ae   :  { %1827 = vmatpush2.bf16.msra.mxu0 %v2604_v35  ;;  %v2634_v35 = vld [vmem:[#allocation11 + $0x18] sm:$0xff]  }
 0x1af   :  { %1828 = vmatprep.subr.bf16.mxu0 %v2609_v37  ;;  %v2635_v37 = vld [vmem:[#allocation11 + $0x50] sm:$0xff]  }
 0x1b2   :  { %1829 = vmatpush2.bf16.msra.mxu0 %v2607_v38  ;;  %v2636_v38 = vld [vmem:[#allocation11 + $0x10] sm:$0xff]  }
 0x1b3   :  { %1830 = vmatprep.subr.bf16.mxu0 %v2612_v40  ;;  %v2638_v40 = vld [vmem:[#allocation11 + $0x8] sm:$0xff]  }
 0x1b6   :  { %1831 = vmatpush2.bf16.msra.mxu0 %v2610_v39  ;;  %v2637_v39 = vld [vmem:[#allocation11 + $0x48] sm:$0xff]  }
 0x1b7   :  { %1832 = vmatprep.subr.bf16.mxu0 %v2615_v41  ;;  %v2639_v41 = vld [vmem:[#allocation11 + $0x40] sm:$0xff]  }
 0x1ba   :  { %1833 = vmatpush2.bf16.msra.mxu0 %v2613_v42  ;;  %v2640_v42 = vld [vmem:[#allocation11] sm:$0xff]  }
 0x1bb   :  { %1834 = vmatprep.subr.bf16.mxu0 %v2618_v43 }
 0x1be   :  { %1835 = vmatpush2.bf16.msra.mxu0 %v2616_v44 }
 0x1bf   :  { %1836 = vmatprep.subr.bf16.mxu0 %v2621_v36 }
 0x1c2   :  { %1837 = vmatpush2.bf16.msra.mxu0 %v2619_v45 }
 0x1c3   :  { %1838 = vmatprep.subr.bf16.mxu0 %v2624_v46  ;;  %v1435_v46 = vld [vmem:[%s3479_s10] sm:$0x3] }
 0x1c4   :  { %v1444_v49 = vrot.slane %v1435_v46, %v1345_v50 }
 0x1c6   :  { %1839 = vmatpush2.bf16.msra.mxu0 %v2622_v47  ;;  %v1440_v47 = vrot.slane %v1435_v46, %v1341_v48 }
 0x227   :  { %v1289_v51 = vpop.f32.mrf.mxu1 }
 0x229   :  { %v1124_v53 = vpop.f32.mrf.mxu0  ;;  %v1291_v54 = vpop.f32.mrf.mxu1 }
 0x22a   :  { %v1290_v55 = vadd.f32 %v1289_v51, %v1124_v53 }
 0x22b   :  { %v1126_v57 = vpop.f32.mrf.mxu0  ;;  %v1293_v58 = vpop.f32.mrf.mxu1 }
 0x22c   :  { %v1359_v59 = vadd.f32 %v1342_v52, %v1290_v55  ;;  %v1292_v60 = vadd.f32 %v1291_v54, %v1126_v57 }
 0x22d   :  { %v1128_v61 = vpop.f32.mrf.mxu0  ;;  %v1294_v62 = vpop.f32.mrf.mxu1 }
 0x22e   :  { %v1360_v63 = vadd.f32 %v1346_v56, %v1292_v60  ;;  %v1363_v0 = vmax.f32 %v1359_v59, 0.0 }
 0x22f   :  { %v1129_v1 = vpop.f32.mrf.mxu0 }
 0x230   :  { %v1364_v2 = vmax.f32 %v1360_v63, 0.0  ;;  %v1367_v4 = vpack.c.bf16 %v1363_v0, %v1363_v0  ;;  %v2826_v63 = vmov 1966171168  }
 0x231   :  { %v2031_v0 = vunpack.c.l.s4 %v2826_v63 }
 0x232   :  { %v1368_v3 = vpack.c.bf16 %v1364_v2, %v1364_v2  ;;  %v2249_v2 = vld [vmem:[#allocation13] ss:$0 sm:$0xff] }
 0x233   :  { %v2032_v1 = vunpack.c.0.s8 %v2031_v0 }
 0x234   :  { %1799 = vmatprep.mubr.bf16.mxu1 %v1368_v3 }
 0x235   :  { %1800 = vmatmul.mubr.bf16.vlgmr.msra.gmra.mxu1 %v1367_v4 }
 0x236   :  { %2359 = vmatpush3.bf16.msra.mxu1 %v2626_v26 }
 0x237   :  { %2360 = vmatprep.subr.bf16.mxu1 %v2627_v27 }
 0x239   :  { %v1165_v5 = vpop.f32.mrf.mxu0 }
 0x23a   :  { %2361 = vmatpush3.bf16.msra.mxu1 %v2628_v28 }
 0x23b   :  { %v1167_v6 = vpop.f32.mrf.mxu0  ;;  %2362 = vmatprep.subr.bf16.mxu1 %v2629_v29 }
 0x23d   :  { %v1169_v7 = vpop.f32.mrf.mxu0 }
 0x23e   :  { %2363 = vmatpush3.bf16.msra.mxu1 %v2630_v30 }
 0x23f   :  { %v1170_v8 = vpop.f32.mrf.mxu0  ;;  %2364 = vmatprep.subr.bf16.mxu1 %v2631_v32 }
 0x242   :  { %2365 = vmatpush3.bf16.msra.mxu1 %v2632_v33 }
 0x243   :  { %2366 = vmatprep.subr.bf16.mxu1 %v2633_v34 }
 0x246   :  { %2367 = vmatpush3.bf16.msra.mxu1 %v2634_v35 }
 0x247   :  { %2368 = vmatprep.subr.bf16.mxu1 %v2635_v37 }
 0x249   :  { %v1330_v12 = vpop.f32.mrf.mxu0 }
 0x24a   :  { %v1331_v13 = vadd.f32 %v1330_v12, %v1165_v5  ;;  %2369 = vmatpush3.bf16.msra.mxu1 %v2636_v38 }
 0x24b   :  { %v1332_v15 = vpop.f32.mrf.mxu0  ;;  %2370 = vmatprep.subr.bf16.mxu1 %v2637_v39 }
 0x24c   :  { %v1361_v16 = vadd.f32 %v1350_v11, %v1331_v13  ;;  %v1333_v17 = vadd.f32 %v1332_v15, %v1167_v6  ;;  %v2035_v6 = vsub.s32 %v2032_v1, %v3002_v31 }
 0x24d   :  { %v1334_v18 = vpop.f32.mrf.mxu0 }
 0x24e   :  { %v1362_v19 = vadd.f32 %v1354_v14, %v1333_v17  ;;  %v1365_v20 = vmax.f32 %v1361_v16, 0.0  ;;  %2371 = vmatpush3.bf16.msra.mxu1 %v2638_v40 }
 0x24f   :  { %v1335_v21 = vpop.f32.mrf.mxu0  ;;  %2372 = vmatprep.subr.bf16.mxu1 %v2639_v41 }
 0x250   :  { %v1366_v22 = vmax.f32 %v1362_v19, 0.0  ;;  %v1369_v24 = vpack.c.bf16 %v1365_v20, %v1365_v20 }
 0x252   :  { %v1370_v23 = vpack.c.bf16 %v1366_v22, %v1366_v22  ;;  %2373 = vmatpush3.bf16.msra.mxu1 %v2640_v42 }
 0x254   :  { %1840 = vmatprep.mubr.bf16.mxu0 %v1370_v23 }
 0x255   :  { %1841 = vmatmul.mubr.bf16.vlgmr.msra.gmra.mxu0 %v1369_v24 }
 0x2f5   :  { %v1801_v43 = vpop.f32.mrf.mxu1 }
 0x2f6   :  { %v1802_v51 = vadd.f32 %v1801_v43, %v1440_v47 }
 0x2f7   :  { %v1803_v44 = vpop.f32.mrf.mxu1 }
 0x2f8   :  { %v1804_v53 = vadd.f32 %v1803_v44, %v1444_v49 }
 0x2f9   :  { %v1805_v36 = vpop.f32.mrf.mxu1 }
 0x2fb   :  { %v1806_v45 = vpop.f32.mrf.mxu1 }
 0x315   :  { %v1842_v52 = vpop.f32.mrf.mxu0 }
 0x316   :  { %v1843_v54 = vadd.f32 %v1842_v52, %v1802_v51 }
 0x317   :  { %v1844_v55 = vpop.f32.mrf.mxu0 }
 0x318   :  { %v1845_v56 = vadd.f32 %v1844_v55, %v1804_v53  ;;  %v1849_v57 = vmax.f32 %v1843_v54, 0.0 }
 0x319   :  { %v1846_v58 = vpop.f32.mrf.mxu0 }
 0x31a   :  { %v1850_v59 = vmax.f32 %v1845_v56, 0.0  ;;  %v1851_v62 = vpack.c.bf16 %v1849_v57, %v1849_v57 }
 0x31b   :  { %v1847_v60 = vpop.f32.mrf.mxu0 }
 0x31c   :  { %v1852_v61 = vpack.c.bf16 %v1850_v59, %v1850_v59 }
 0x31e   :  { %2020 = vmatprep.mubr.bf16.mxu1 %v1852_v61 }
 0x31f   :  { %2021 = vmatmul.mubr.bf16.vlgmr.msra.gmra.mxu1 %v1851_v62 }
 0x3df   :  { %v2374_v48 = vpop.f32.mrf.mxu1 }
 0x3e1   :  { %v2375_v50 = vpop.f32.mrf.mxu1 }
 0x3e2   :  { %v2376_v3 = vadd.f32 %v2375_v50, %v2374_v48 }
 0x3e3   :  { %v2377_v4 = vpop.f32.mrf.mxu1 }
 0x3e4   :  { %v2023_v5 = vadd.f32 %v2376_v3, %v2249_v2 }
 0x3e5   :  { %v2378_v7 = vpop.f32.mrf.mxu1 }
 0x3e6   :  { %v2028_v8 = vpack.c.bf16 %v2023_v5, %v2023_v5 }
 0x3e8   :  { %v2036_v9 = vrot.slane %v2028_v8, %v2035_v6 }
 0x3ea   :  { %v2037_v10 = vcombine.high %v2036_v9, %v2036_v9  ;;  %v2044_v11 = vrot.slane %v2036_v9, %v2035_v6  ;;  %2266 = vst.sshfl [vmem:[#allocation14] sm:$0x1 pattern:$0x73625140] %v2036_v9 }
 0x3ec   :  { %v2051_v12 = vrot.slane %v2037_v10, %v2035_v6  ;;  %v2052_v13 = vcombine.high %v2044_v11, %v2044_v11  ;;  %2267 = vst.sshfl [vmem:[#allocation14 + $0x1] sm:$0x1 pattern:$0x73625140] %v2037_v10 }
 0x3ee   :  { %v2053_v14 = vcombine.high %v2051_v12, %v2051_v12  ;;  %2060 = vst [vmem:[#allocation14 + $0x2] sm:$0x1] %v2052_v13 }
 0x3f0   :  { %2061 = vst [vmem:[#allocation14 + $0x3] sm:$0x1] %v2053_v14 }
 0x3f1   :  { %2066 = vsyncadd [#allocation4], 48  ;;  %s2827_s10 = smov [#allocation14]  }
 0x3f2   :  { %s2067_s8 = sshll.u32 %s2827_s10, 4  ;;  %s2068_s8 = int_to_ptr.vmem [resolvable:$true] %s2067_s8 }
 0x3f3   :  { %s2781_s5 = scalar_lea.vmem %s2068_s8, 16  ;;  %s2785_s28 = scalar_lea.vmem %s2068_s8, 64 }
 0x3f4   :  { %p2782_p7 = scmp.ne.s32.totalorder %s2068_s8, %s2781_s5  ;;  %p2786_p8 = scmp.lt.s32.totalorder %s2068_s8, %s2068_s8 }
 0x3f5   :  { %p2787_p9 = scmp.lt.s32.totalorder %s2785_s28, %s2781_s5 }
 0x3f7   :  { %p2788_p10 = por %p2787_p9, %p2786_p8 }
 0x3f9   :  { %p2789_p11 = pnand %p2788_p10, %p2782_p7 }
 0x3fb   :  { %2792 = shalt.err (!%p2789_p11)
}
 0x3fc   :  { %s2828_s29 = smov 16   ;;  %s2829_s30 = smov 1  }
 0x3fd   :  { %2073 = dma.vmem_to_hbm [thread:$0]  %s2068_s8, 16, %s3482_s13, [#allocation4], %s2828_s29, %s2828_s29, %s2829_s30  }
 0x3fe   :  { %2809 = dma.done.wait [#allocation4], 64  }
 0x3ff   :  { %2810 = vsyncadd [#allocation4], 4294967232 }
 0x400   :  { %2077 = vsyncpa [#allocation3], 1 }
 0x401   :  { %2078 = vsyncpa [#allocation6], 1 }
 0x402   :  { %2079 = vsyncpa [#allocation9], 1 }
 0x403   :  { %2080 = vsyncpa [#allocation12], 1 }
 0x404   :  { %2081 = vsyncpa [#allocation4], 1 }

</bundles_post_ra>
